<compile_context>
chip_gen: v5e
topology: v5e:2x2
jax: 0.10.0
libtpu: 0.0.40
codegen_flags: <defaults>
</compile_context>

<pallas_src>
import math
import functools

import jax
import jax.numpy as jnp
from jax import lax
from jax.experimental import pallas as pl
from jax.experimental.pallas import tpu as pltpu


# Dtype fed to the MXU.  f32 accumulation everywhere; set to jnp.float32 for
# bit-closer-to-torch numerics (at 2x the HBM traffic).
MATMUL_DTYPE = jnp.bfloat16
# Cross-attention weights returned to the caller.  Set to jnp.bfloat16 to
# halve the largest HBM writeback in the model if strict parity is not needed.
ATTN_WEIGHTS_DTYPE = jnp.float32

_MASK_NEG = -1e9  # large finite negative; avoids NaN from exp(-inf - -inf)


def _default_vmem_limit():
    # 96 MiB on 128-MiB-VMEM parts (v5e/v6e), 48 MiB on 64-MiB parts (v7x).
    try:
        cap = pltpu.get_tpu_info().vmem_capacity_bytes
        if cap >= 100 * 1024 * 1024:
            return 96 * 1024 * 1024
        return 48 * 1024 * 1024
    except Exception:
        return 48 * 1024 * 1024


_VMEM_LIMIT = _default_vmem_limit()


def _sublane_align():
    # bf16 packs 2 rows per sublane -> prefer 16-row alignment for M tiles.
    return 16 if MATMUL_DTYPE == jnp.bfloat16 else 8


def _pick_tile(dim, target, align, prefer_align=None):
    """Largest aligned divisor of dim that is <= target (or the full dim)."""
    if dim <= target:
        return dim
    aligns = []
    if prefer_align:
        aligns.append(prefer_align)
    aligns.append(align)
    for a in aligns:
        t = (target // a) * a
        while t >= a:
            if dim % t == 0:
                return t
            t -= a
    return dim


# ----------------------------------------------------------------------------
# Tiled linear kernel (bias + optional ReLU + optional fused residual add)
# ----------------------------------------------------------------------------

def _linear_kernel(x_ref, w_ref, b_ref, *rest, apply_relu, has_residual):
    if has_residual:
        res_ref, o_ref, acc_ref = rest
    else:
        res_ref = None
        o_ref, acc_ref = rest

    k = pl.program_id(2)

    @pl.when(k == 0)
    def _init():
        acc_ref[...] = jnp.zeros_like(acc_ref)

    acc_ref[...] += jnp.dot(x_ref[...], w_ref[...],
                            preferred_element_type=jnp.float32)

    @pl.when(k == pl.num_programs(2) - 1)
    def _finalize():
        y = acc_ref[...] + b_ref[...]
        if apply_relu:
            y = jnp.maximum(y, 0.0)
        if has_residual:
            y = y + res_ref[...].astype(jnp.float32)
        o_ref[...] = y.astype(o_ref.dtype)


def linear(x2d, w, b, *, apply_relu=False, residual=None, out_dtype=jnp.float32):
    """(rows, d_in) @ (d_in, d_out) + b [+ residual], tiled for the MXU.
    Weights are expected to be pre-cast to MATMUL_DTYPE (done in init_params)."""
    rows, d_in = x2d.shape
    d_out = w.shape[1]

    tm = _pick_tile(rows, 512, _sublane_align())
    tn = _pick_tile(d_out, 512, 128, prefer_align=256)
    tk = _pick_tile(d_in, 512, 128, prefer_align=256)
    grid = (rows // tm, d_out // tn, d_in // tk)

    in_specs = [
        pl.BlockSpec((tm, tk), lambda i, j, k: (i, k)),
        pl.BlockSpec((tk, tn), lambda i, j, k: (k, j)),
        pl.BlockSpec((1, tn), lambda i, j, k: (0, j)),
    ]
    args = [x2d.astype(MATMUL_DTYPE), w, b.reshape(1, d_out).astype(jnp.float32)]
    if residual is not None:
        in_specs.append(pl.BlockSpec((tm, tn), lambda i, j, k: (i, j)))
        args.append(residual)

    kernel = functools.partial(_linear_kernel, apply_relu=apply_relu,
                               has_residual=residual is not None)
    return pl.pallas_call(
        kernel,
        grid=grid,
        in_specs=in_specs,
        out_specs=pl.BlockSpec((tm, tn), lambda i, j, k: (i, j)),
        out_shape=jax.ShapeDtypeStruct((rows, d_out), out_dtype),
        scratch_shapes=[pltpu.VMEM((tm, tn), jnp.float32)],
        compiler_params=pltpu.CompilerParams(
            dimension_semantics=("parallel", "parallel", "arbitrary"),
            vmem_limit_bytes=_VMEM_LIMIT),
    )(*args)


# ----------------------------------------------------------------------------
# Row-tiled LayerNorm (optionally fused with a preceding element-wise add;
# the `add` operand may have fewer rows than x and is reused via a modulo
# index_map -- used for the positional embedding).
# ----------------------------------------------------------------------------

def _layernorm_kernel(x_ref, g_ref, b_ref, *rest, eps, has_add):
    if has_add:
        a_ref, o_ref = rest
    else:
        a_ref = None
        (o_ref,) = rest
    x = x_ref[...].astype(jnp.float32)
    if has_add:
        x = x + a_ref[...].astype(jnp.float32)
    mean = jnp.mean(x, axis=-1, keepdims=True)
    var = jnp.mean(jnp.square(x - mean), axis=-1, keepdims=True)
    y = (x - mean) * lax.rsqrt(var + eps)
    o_ref[...] = (y * g_ref[...] + b_ref[...]).astype(o_ref.dtype)


def layernorm(x2d, gamma, beta, *, add=None, eps=1e-5, out_dtype=jnp.float32):
    rows, d = x2d.shape
    align = _sublane_align()
    if add is not None:
        # add rows must divide x rows (true for the (T, D) positional table).
        tm = _pick_tile(add.shape[0], 512, align)
    else:
        tm = _pick_tile(rows, 512, align)
    grid = (rows // tm,)

    in_specs = [
        pl.BlockSpec((tm, d), lambda i: (i, 0)),
        pl.BlockSpec((1, d), lambda i: (0, 0)),
        pl.BlockSpec((1, d), lambda i: (0, 0)),
    ]
    args = [x2d, gamma.reshape(1, d), beta.reshape(1, d)]
    if add is not None:
        n_add_blocks = add.shape[0] // tm
        in_specs.append(pl.BlockSpec((tm, d), lambda i: (i % n_add_blocks, 0)))
        args.append(add)

    return pl.pallas_call(
        functools.partial(_layernorm_kernel, eps=eps, has_add=add is not None),
        grid=grid,
        in_specs=in_specs,
        out_specs=pl.BlockSpec((tm, d), lambda i: (i, 0)),
        out_shape=jax.ShapeDtypeStruct((rows, d), out_dtype),
        compiler_params=pltpu.CompilerParams(
            dimension_semantics=("parallel",),
            vmem_limit_bytes=_VMEM_LIMIT),
    )(*args)


# ----------------------------------------------------------------------------
# Multi-head attention kernel: grid = (batch, head), head-major inputs.
# Per grid step: one head's scores/softmax/context; the (Tq, Tk) weights
# block (when requested) is emitted per head -> no (H, Tq, Tk) VMEM bomb.
# Scaling is folded into the Q projection weights; no explicit transpose.
# ----------------------------------------------------------------------------

def _attn_kernel(*refs, head_dim, fused_qkv, has_mask, mask_heads, num_heads,
                 return_weights):
    refs = list(refs)
    if fused_qkv:
        qkv_ref = refs.pop(0)
        kv_ref = None
    else:
        q_ref = refs.pop(0)
        kv_ref = refs.pop(0)
    mask_ref = refs.pop(0) if has_mask else None
    o_ref = refs.pop(0)
    w_ref = refs.pop(0) if return_weights else None

    hd = head_dim
    if fused_qkv:
        slab = qkv_ref[0, 0]              # (T, 3*hd) -- this head's q|k|v
        q = slab[:, 0:hd]
        k = slab[:, hd:2 * hd]
        v = slab[:, 2 * hd:3 * hd]
    else:
        q = q_ref[0, 0]                   # (Tq, hd)
        kvs = kv_ref[0, 0]                # (Tk, 2*hd)
        k = kvs[:, 0:hd]
        v = kvs[:, hd:2 * hd]

    # Contract the last dims of q and k directly on the MXU (no .T / XLU).
    scores = lax.dot_general(q, k, dimension_numbers=(((1,), (1,)), ((), ())),
                             preferred_element_type=jnp.float32)

    if has_mask:
        h = pl.program_id(1)
        if mask_heads == num_heads:
            mh = mask_ref[h]              # per-head mask row (dim0 -> heads)
        else:
            mh = mask_ref[0]
        scores = scores + mh.astype(jnp.float32)

    m = jnp.max(scores, axis=-1, keepdims=True)
    p = jnp.exp(scores - m)
    denom = jnp.sum(p, axis=-1, keepdims=True)
    probs = p * pl.reciprocal(denom, approx=True)

    ctx = lax.dot_general(probs.astype(v.dtype), v,
                          dimension_numbers=(((1,), (0,)), ((), ())),
                          preferred_element_type=jnp.float32)
    o_ref[0, 0] = ctx.astype(o_ref.dtype)
    if return_weights:
        w_ref[0, 0] = probs.astype(w_ref.dtype)


def attention_core(q_hm, kv_hm, mask3d, *, head_dim, return_weights,
                   out_dtype=jnp.float32):
    """q_hm: (B, H, Tq, 3*hd) fused head-major QKV if kv_hm is None,
             else (B, H, Tq, hd) head-major Q.
       kv_hm: (B, H, Tk, 2*hd) head-major fused K|V, or None.
       mask3d: processed additive mask with ndim == 3 (or None).
       Returns head-major context (B, H, Tq, hd) [+ weights (B, H, Tq, Tk)]."""
    fused_qkv = kv_hm is None
    B, H, Tq = q_hm.shape[0], q_hm.shape[1], q_hm.shape[2]
    hd = head_dim
    Tk = Tq if fused_qkv else kv_hm.shape[2]

    in_specs = []
    args = []
    if fused_qkv:
        in_specs.append(pl.BlockSpec((1, 1, Tq, 3 * hd),
                                     lambda b, h: (b, h, 0, 0)))
        args.append(q_hm)
    else:
        in_specs.append(pl.BlockSpec((1, 1, Tq, hd),
                                     lambda b, h: (b, h, 0, 0)))
        in_specs.append(pl.BlockSpec((1, 1, Tk, 2 * hd),
                                     lambda b, h: (b, h, 0, 0)))
        args.append(q_hm)
        args.append(kv_hm)

    mask_heads = 0
    if mask3d is not None:
        Bm, Sm, Dm = mask3d.shape
        mask_heads = Bm
        # Constant index map: the mask block is loaded once and reused.
        in_specs.append(pl.BlockSpec((Bm, Sm, Dm), lambda b, h: (0, 0, 0)))
        args.append(mask3d.astype(jnp.float32))

    out_shape = [jax.ShapeDtypeStruct((B, H, Tq, hd), out_dtype)]
    out_specs = [pl.BlockSpec((1, 1, Tq, hd), lambda b, h: (b, h, 0, 0))]
    if return_weights:
        out_shape.append(jax.ShapeDtypeStruct((B, H, Tq, Tk),
                                              ATTN_WEIGHTS_DTYPE))
        out_specs.append(pl.BlockSpec((1, 1, Tq, Tk),
                                      lambda b, h: (b, h, 0, 0)))

    kernel = functools.partial(
        _attn_kernel, head_dim=hd, fused_qkv=fused_qkv,
        has_mask=mask3d is not None, mask_heads=mask_heads,
        num_heads=H, return_weights=return_weights)

    outs = pl.pallas_call(
        kernel,
        grid=(B, H),
        in_specs=in_specs,
        out_specs=out_specs,
        out_shape=out_shape,
        compiler_params=pltpu.CompilerParams(
            dimension_semantics=("parallel", "parallel"),
            vmem_limit_bytes=_VMEM_LIMIT),
    )(*args)

    if return_weights:
        return outs[0], outs[1]
    return outs[0], None


# ----------------------------------------------------------------------------
# Model glue (plain JAX between pallas_calls)
# ----------------------------------------------------------------------------

def process_attention_mask(mask):
    # torch: mask.float().masked_fill(mask==0, -inf).masked_fill(mask==1, 0.)
    # We use a large finite negative instead of -inf (avoids NaN on rows that
    # are entirely masked); softmax result is numerically identical otherwise.
    orig = mask
    mf = mask.astype(jnp.float32)
    mf = jnp.where(orig == 0, _MASK_NEG, mf)
    mf = jnp.where(orig == 1, 0.0, mf)
    # Normalize to ndim==3 so trailing-dim broadcast onto (B,H,Tq,Tk) logits
    # matches PyTorch exactly (dim0 -> heads, dim1 -> tgt, dim2 -> src).
    # TODO(synk): masks with ndim > 3 (per-batch 4-D masks) are not handled.
    while mf.ndim < 3:
        mf = mf[None]
    return mf


def mbart_decoder_layer(hidden2d, enc2d, enc_shape, p, dec_mask3d, enc_mask3d,
                        num_heads):
    rows, D = hidden2d.shape
    B, S, _ = enc_shape
    T = rows // B
    hd = D // num_heads

    # --- self-attention block (weights discarded, never materialized) ---
    residual = hidden2d
    x = layernorm(residual, p["ln1_g"], p["ln1_b"], out_dtype=MATMUL_DTYPE)
    qkv = linear(x, p["self_attn"]["qkv_w"], p["self_attn"]["qkv_b"],
                 out_dtype=MATMUL_DTYPE)
    # Columns are head-major ([h: q|k|v]); torch's _shape transpose done once.
    qkv_hm = qkv.reshape(B, T, num_heads, 3 * hd).transpose(0, 2, 1, 3)
    ctx_hm, _ = attention_core(qkv_hm, None, dec_mask3d, head_dim=hd,
                               return_weights=False, out_dtype=MATMUL_DTYPE)
    attn_out = ctx_hm.transpose(0, 2, 1, 3).reshape(rows, D)
    hidden2d = linear(attn_out, p["self_attn"]["o_w"], p["self_attn"]["o_b"],
                      residual=residual)

    # --- cross-attention block (weights returned) ---
    residual = hidden2d
    x = layernorm(residual, p["ln2_g"], p["ln2_b"], out_dtype=MATMUL_DTYPE)
    q = linear(x, p["cross_attn"]["q_w"], p["cross_attn"]["q_b"],
               out_dtype=MATMUL_DTYPE)
    kv = linear(enc2d, p["cross_attn"]["kv_w"], p["cross_attn"]["kv_b"],
                out_dtype=MATMUL_DTYPE)
    q_hm = q.reshape(B, T, num_heads, hd).transpose(0, 2, 1, 3)
    kv_hm = kv.reshape(B, S, num_heads, 2 * hd).transpose(0, 2, 1, 3)
    ctx_hm, cross_w = attention_core(q_hm, kv_hm, enc_mask3d, head_dim=hd,
                                     return_weights=True,
                                     out_dtype=MATMUL_DTYPE)
    attn_out = ctx_hm.transpose(0, 2, 1, 3).reshape(rows, D)
    hidden2d = linear(attn_out, p["cross_attn"]["o_w"], p["cross_attn"]["o_b"],
                      residual=residual)

    # --- feed-forward block ---
    residual = hidden2d
    x = layernorm(residual, p["ln3_g"], p["ln3_b"], out_dtype=MATMUL_DTYPE)
    h1 = linear(x, p["fc1_w"], p["fc1_b"], apply_relu=True,
                out_dtype=MATMUL_DTYPE)
    hidden2d = linear(h1, p["fc2_w"], p["fc2_b"], residual=residual)

    return hidden2d, cross_w


def sinusoidal_positions(seq_len, embedding_dim, padding_idx):
    # Static-shape constant; XLA constant-folds it under jit.
    positions = jnp.arange(padding_idx + 1, seq_len + padding_idx + 1,
                           dtype=jnp.float32)
    half_dim = embedding_dim // 2
    emb = math.log(10000.0) / (half_dim - 1)
    freqs = jnp.exp(jnp.arange(half_dim, dtype=jnp.float32) * -emb)
    emb = jnp.outer(positions, freqs)
    emb = jnp.concatenate([jnp.sin(emb), jnp.cos(emb)], axis=1)
    return emb  # embedding_dim is even here, no padding branch needed


def mbart_decoder_forward(params, decoder_input_ids, encoder_outputs,
                          decoder_attention_mask=None, *, num_heads,
                          pad_token_id):
    B, T = decoder_input_ids.shape
    D = params["embed_tokens"].shape[1]
    rows = B * T

    # TODO(synk): embedding gather left to XLA (no clean Pallas gather for a
    # [vocab, D] table on TPU).
    inputs_embeds = jnp.take(params["embed_tokens"], decoder_input_ids, axis=0)
    pos = sinusoidal_positions(T, D, pad_token_id)            # (T, D)
    # Fused LayerNorm(inputs_embeds + position_embeddings); the (T, D) pos
    # table is reused across batch via a modulo index_map (no jnp.tile).
    decoder2d = layernorm(inputs_embeds.reshape(rows, D),
                          params["ln_emb_g"], params["ln_emb_b"],
                          add=pos, out_dtype=jnp.float32)

    encoder_hidden_states = encoder_outputs[0]                # (B, S, D)
    S = encoder_hidden_states.shape[1]
    enc2d = encoder_hidden_states.reshape(B * S, D).astype(MATMUL_DTYPE)

    dec_mask3d = (None if decoder_attention_mask is None
                  else process_attention_mask(decoder_attention_mask))
    # Quirk preserved from the PyTorch module: encoder_outputs[0] is used as
    # the cross-attention "padding mask"; processed once, reused every layer.
    enc_mask3d = process_attention_mask(encoder_hidden_states)

    all_decoder_layers = []
    all_cross_attention_layers = []
    for lp in params["layers"]:
        decoder2d, cross_w = mbart_decoder_layer(
            decoder2d, enc2d, (B, S, D), lp, dec_mask3d, enc_mask3d, num_heads)
        all_decoder_layers.append(decoder2d.reshape(B, T, D))
        all_cross_attention_layers.append(cross_w)

    return (decoder2d.reshape(B, T, D), all_decoder_layers,
            all_cross_attention_layers)


# ----------------------------------------------------------------------------
# Deterministic parameter init (head-major fused QKV / KV layouts, bf16
# weights, 1/sqrt(head_dim) folded into the Q projection; torch-equivalent)
# ----------------------------------------------------------------------------

def init_params(key, *, vocab_size, hidden_size, ffn_dim, num_layers,
                num_heads, pad_token_id):
    D = hidden_size
    hd = D // num_heads
    scaling = hd ** (-0.5)

    def nrm(k, shape, scale=0.02):
        return scale * jax.random.normal(k, shape, dtype=jnp.float32)

    keys = jax.random.split(key, 2 + num_layers)
    embed = nrm(keys[0], (vocab_size, D))
    embed = embed.at[pad_token_id].set(0.0)  # nn.Embedding padding_idx behavior

    def head_major_fuse(mats):
        # mats: list of (D, D) pre-transposed (d_in, d_out) weights.
        # Returns (D, len(mats)*D) with per-head column groups [h: m0_h|m1_h|...].
        blocks = []
        for h in range(num_heads):
            cs = slice(h * hd, (h + 1) * hd)
            for m in mats:
                blocks.append(m[:, cs])
        return jnp.concatenate(blocks, axis=1)

    def self_attn_params(k):
        ks = jax.random.split(k, 4)
        wq = nrm(ks[0], (D, D)) * scaling  # fold q*scaling into the projection
        wk = nrm(ks[1], (D, D))
        wv = nrm(ks[2], (D, D))
        qkv_w = head_major_fuse([wq, wk, wv])
        # Biases are zero; a non-zero q bias would also be scaled by `scaling`
        # and laid out head-major to match qkv_w.
        return {"qkv_w": qkv_w.astype(MATMUL_DTYPE),
                "qkv_b": jnp.zeros((3 * D,), jnp.float32),
                "o_w": nrm(ks[3], (D, D)).astype(MATMUL_DTYPE),
                "o_b": jnp.zeros((D,), jnp.float32)}

    def cross_attn_params(k):
        ks = jax.random.split(k, 4)
        wq = nrm(ks[0], (D, D)) * scaling
        wk = nrm(ks[1], (D, D))
        wv = nrm(ks[2], (D, D))
        kv_w = head_major_fuse([wk, wv])
        return {"q_w": wq.astype(MATMUL_DTYPE),
                "q_b": jnp.zeros((D,), jnp.float32),
                "kv_w": kv_w.astype(MATMUL_DTYPE),
                "kv_b": jnp.zeros((2 * D,), jnp.float32),
                "o_w": nrm(ks[3], (D, D)).astype(MATMUL_DTYPE),
                "o_b": jnp.zeros((D,), jnp.float32)}

    layers = []
    for li in range(num_layers):
        ks = jax.random.split(keys[2 + li], 4)
        layers.append({
            "self_attn": self_attn_params(ks[0]),
            "cross_attn": cross_attn_params(ks[1]),
            "ln1_g": jnp.ones((D,), jnp.float32), "ln1_b": jnp.zeros((D,), jnp.float32),
            "ln2_g": jnp.ones((D,), jnp.float32), "ln2_b": jnp.zeros((D,), jnp.float32),
            "ln3_g": jnp.ones((D,), jnp.float32), "ln3_b": jnp.zeros((D,), jnp.float32),
            "fc1_w": nrm(ks[2], (D, ffn_dim)).astype(MATMUL_DTYPE),
            "fc1_b": jnp.zeros((ffn_dim,), jnp.float32),
            "fc2_w": nrm(ks[3], (ffn_dim, D)).astype(MATMUL_DTYPE),
            "fc2_b": jnp.zeros((D,), jnp.float32),
        })

    return {
        "embed_tokens": embed,
        "ln_emb_g": jnp.ones((D,), jnp.float32),
        "ln_emb_b": jnp.zeros((D,), jnp.float32),
        "layers": layers,
    }


# ----------------------------------------------------------------------------
# Main
# ----------------------------------------------------------------------------

if __name__ == "__main__":
    # Small config consistent with the module's broadcast requirements:
    # hidden_size == src_len == tgt_len, bsz == 1 so that the
    # encoder_padding_mask = encoder_outputs[0] quirk broadcasts legally.
    VOCAB = 100
    HIDDEN = 32
    HEADS = 4
    FFN = 64
    LAYERS = 2
    PAD = 1
    B, T, S = 1, 32, 32

    key = jax.random.PRNGKey(0)
    k_par, k_ids, k_enc = jax.random.split(key, 3)

    params = init_params(k_par, vocab_size=VOCAB, hidden_size=HIDDEN,
                         ffn_dim=FFN, num_layers=LAYERS, num_heads=HEADS,
                         pad_token_id=PAD)

    decoder_input_ids = jax.random.randint(k_ids, (B, T), 2, VOCAB,
                                           dtype=jnp.int32)
    encoder_hidden_states = jax.random.normal(k_enc, (B, S, HIDDEN),
                                              dtype=jnp.float32)
    encoder_outputs = (encoder_hidden_states,)

    fwd = jax.jit(functools.partial(mbart_decoder_forward,
                                    num_heads=HEADS, pad_token_id=PAD))
    decoder_states, all_layers, all_cross = fwd(params, decoder_input_ids,
                                                encoder_outputs, None)

    jax.block_until_ready(decoder_states)
    for a in all_layers:
        jax.block_until_ready(a)
    for a in all_cross:
        jax.block_until_ready(a)

    assert decoder_states.shape == (B, T, HIDDEN)
    assert all_cross[0].shape == (B, HEADS, T, S)
    assert bool(jnp.all(jnp.isfinite(decoder_states)))
    assert bool(jnp.all(jnp.isfinite(all_cross[-1])))
    print("KERNEL_OK")
</pallas_src>

<mosaic_0001>
module attributes {stable_mosaic.version = 11 : i64} {
  func.func @_layernorm_kernel(%arg0: i32, %arg1: memref<32x32xf32, #tpu.memory_space<vmem>>, %arg2: memref<1x32xf32, #tpu.memory_space<vmem>>, %arg3: memref<1x32xf32, #tpu.memory_space<vmem>>, %arg4: memref<32x32xbf16, #tpu.memory_space<vmem>>) attributes {dimension_semantics = [#tpu.dimension_semantics<parallel>], iteration_bounds = array<i64: 1>, scalar_prefetch = 0 : i64, scratch_operands = 0 : i64, tpu.core_type = #tpu.core_type<tc>, window_params = [{transform_indices = @transform_0, window_bounds = array<i64: 32, 32>}, {pipeline_mode = #tpu.pipeline_mode<synchronous>, transform_indices = @transform_1, window_bounds = array<i64: 1, 32>}, {pipeline_mode = #tpu.pipeline_mode<synchronous>, transform_indices = @transform_2, window_bounds = array<i64: 1, 32>}, {transform_indices = @transform_3, window_bounds = array<i64: 32, 32>}]} {
    %c0 = arith.constant 0 : index
    %c0_0 = arith.constant 0 : index
    %0 = vector.load %arg1[%c0, %c0_0] : memref<32x32xf32, #tpu.memory_space<vmem>>, vector<32x32xf32>
    %cst = arith.constant dense<0.000000e+00> : vector<32xf32>
    %1 = vector.multi_reduction <add>, %0, %cst [1] : vector<32x32xf32> to vector<32xf32>
    %2 = vector.shape_cast %1 : vector<32xf32> to vector<32x1xf32>
    %cst_1 = arith.constant 3.200000e+01 : f32
    %3 = vector.broadcast %cst_1 : f32 to vector<32x1xf32>
    %4 = arith.divf %2, %3 : vector<32x1xf32>
    %5 = vector.broadcast %4 : vector<32x1xf32> to vector<32x32xf32>
    %6 = arith.subf %0, %5 : vector<32x32xf32>
    %7 = arith.mulf %6, %6 : vector<32x32xf32>
    %cst_2 = arith.constant dense<0.000000e+00> : vector<32xf32>
    %8 = vector.multi_reduction <add>, %7, %cst_2 [1] : vector<32x32xf32> to vector<32xf32>
    %9 = vector.shape_cast %8 : vector<32xf32> to vector<32x1xf32>
    %cst_3 = arith.constant 3.200000e+01 : f32
    %10 = vector.broadcast %cst_3 : f32 to vector<32x1xf32>
    %11 = arith.divf %9, %10 : vector<32x1xf32>
    %12 = vector.broadcast %4 : vector<32x1xf32> to vector<32x32xf32>
    %13 = arith.subf %0, %12 : vector<32x32xf32>
    %cst_4 = arith.constant 9.99999974E-6 : f32
    %14 = vector.broadcast %cst_4 : f32 to vector<32x1xf32>
    %15 = arith.addf %11, %14 : vector<32x1xf32>
    %16 = math.rsqrt %15 : vector<32x1xf32>
    %17 = vector.broadcast %16 : vector<32x1xf32> to vector<32x32xf32>
    %18 = arith.mulf %13, %17 : vector<32x32xf32>
    %c0_5 = arith.constant 0 : index
    %c0_6 = arith.constant 0 : index
    %19 = vector.load %arg2[%c0_5, %c0_6] : memref<1x32xf32, #tpu.memory_space<vmem>>, vector<1x32xf32>
    %20 = vector.broadcast %19 : vector<1x32xf32> to vector<32x32xf32>
    %21 = arith.mulf %18, %20 : vector<32x32xf32>
    %c0_7 = arith.constant 0 : index
    %c0_8 = arith.constant 0 : index
    %22 = vector.load %arg3[%c0_7, %c0_8] : memref<1x32xf32, #tpu.memory_space<vmem>>, vector<1x32xf32>
    %23 = vector.broadcast %22 : vector<1x32xf32> to vector<32x32xf32>
    %24 = arith.addf %21, %23 : vector<32x32xf32>
    %25 = arith.truncf %24 : vector<32x32xf32> to vector<32x32xbf16>
    %c0_9 = arith.constant 0 : index
    %c0_10 = arith.constant 0 : index
    %26 = vector.load %arg4[%c0_9, %c0_10] : memref<32x32xbf16, #tpu.memory_space<vmem>>, vector<32x32xbf16>
    tpu.vector_store %arg4[%c0_9, %c0_10], %25 {strides = array<i32>} : memref<32x32xbf16, #tpu.memory_space<vmem>>, vector<32x32xbf16>,
    return
  }
  func.func @transform_0(%arg0: i32) -> (i32, i32) {
    %c0_i32 = arith.constant 0 : i32
    %c0_i32_0 = arith.constant 0 : i32
    return %arg0, %c0_i32 : i32, i32
  }
  func.func @transform_1(%arg0: i32) -> (i32, i32) {
    %c0_i32 = arith.constant 0 : i32
    %c0_i32_0 = arith.constant 0 : i32
    %c0_i32_1 = arith.constant 0 : i32
    return %c0_i32, %c0_i32_0 : i32, i32
  }
  func.func @transform_2(%arg0: i32) -> (i32, i32) {
    %c0_i32 = arith.constant 0 : i32
    %c0_i32_0 = arith.constant 0 : i32
    %c0_i32_1 = arith.constant 0 : i32
    return %c0_i32, %c0_i32_0 : i32, i32
  }
  func.func @transform_3(%arg0: i32) -> (i32, i32) {
    %c0_i32 = arith.constant 0 : i32
    %c0_i32_0 = arith.constant 0 : i32
    return %arg0, %c0_i32 : i32, i32
  }
}

module attributes {stable_mosaic.version = 11 : i64} {
  func.func @_linear_kernel(%arg0: i32, %arg1: i32, %arg2: i32, %arg3: memref<32x32xbf16, #tpu.memory_space<vmem>>, %arg4: memref<32x96xbf16, #tpu.memory_space<vmem>>, %arg5: memref<1x96xf32, #tpu.memory_space<vmem>>, %arg6: memref<32x96xbf16, #tpu.memory_space<vmem>>, %arg7: memref<32x96xf32, #tpu.memory_space<vmem>>) attributes {dimension_semantics = [#tpu.dimension_semantics<parallel>, #tpu.dimension_semantics<parallel>, #tpu.dimension_semantics<arbitrary>], iteration_bounds = array<i64: 1, 1, 1>, scalar_prefetch = 0 : i64, scratch_operands = 1 : i64, tpu.core_type = #tpu.core_type<tc>, window_params = [{transform_indices = @transform_0, window_bounds = array<i64: 32, 32>}, {transform_indices = @transform_1, window_bounds = array<i64: 32, 96>}, {transform_indices = @transform_2, window_bounds = array<i64: 1, 96>}, {transform_indices = @transform_3, window_bounds = array<i64: 32, 96>}]} {
    %c0_i32 = arith.constant 0 : i32
    %0 = arith.cmpi eq, %arg2, %c0_i32 : i32
    %1 = arith.extui %0 : i1 to i32
    %c0_i32_0 = arith.constant 0 : i32
    %2 = arith.cmpi ne, %1, %c0_i32_0 : i32
    scf.if %2 {
      %cst_10 = arith.constant 0.000000e+00 : f32
      %12 = vector.broadcast %cst_10 : f32 to vector<32x96xf32>
      %c0_11 = arith.constant 0 : index
      %c0_12 = arith.constant 0 : index
      %13 = vector.load %arg7[%c0_11, %c0_12] : memref<32x96xf32, #tpu.memory_space<vmem>>, vector<32x96xf32>
      tpu.vector_store %arg7[%c0_11, %c0_12], %12 {strides = array<i32>} : memref<32x96xf32, #tpu.memory_space<vmem>>, vector<32x96xf32>,
    } else {
    }
    %c0 = arith.constant 0 : index
    %c0_1 = arith.constant 0 : index
    %3 = vector.load %arg7[%c0, %c0_1] : memref<32x96xf32, #tpu.memory_space<vmem>>, vector<32x96xf32>
    %c0_2 = arith.constant 0 : index
    %c0_3 = arith.constant 0 : index
    %4 = vector.load %arg3[%c0_2, %c0_3] : memref<32x32xbf16, #tpu.memory_space<vmem>>, vector<32x32xbf16>
    %c0_4 = arith.constant 0 : index
    %c0_5 = arith.constant 0 : index
    %5 = vector.load %arg4[%c0_4, %c0_5] : memref<32x96xbf16, #tpu.memory_space<vmem>>, vector<32x96xbf16>
    %cst = arith.constant dense<0.000000e+00> : vector<32x96xf32>
    %6 = tpu.matmul %4, %5, %cst {dimension_numbers = #tpu.dot_dimension_numbers<[1], [0], [0], [1], [0, 0, 1, 1], [], []>} : vector<32x32xbf16>, vector<32x96xbf16>, vector<32x96xf32> -> vector<32x96xf32>
    %7 = arith.addf %3, %6 : vector<32x96xf32>
    %c0_6 = arith.constant 0 : index
    %c0_7 = arith.constant 0 : index
    %8 = vector.load %arg7[%c0_6, %c0_7] : memref<32x96xf32, #tpu.memory_space<vmem>>, vector<32x96xf32>
    tpu.vector_store %arg7[%c0_6, %c0_7], %7 {strides = array<i32>} : memref<32x96xf32, #tpu.memory_space<vmem>>, vector<32x96xf32>,
    %c0_i32_8 = arith.constant 0 : i32
    %9 = arith.cmpi eq, %arg2, %c0_i32_8 : i32
    %10 = arith.extui %9 : i1 to i32
    %c0_i32_9 = arith.constant 0 : i32
    %11 = arith.cmpi ne, %10, %c0_i32_9 : i32
    scf.if %11 {
      %c0_10 = arith.constant 0 : index
      %c0_11 = arith.constant 0 : index
      %12 = vector.load %arg7[%c0_10, %c0_11] : memref<32x96xf32, #tpu.memory_space<vmem>>, vector<32x96xf32>
      %c0_12 = arith.constant 0 : index
      %c0_13 = arith.constant 0 : index
      %13 = vector.load %arg5[%c0_12, %c0_13] : memref<1x96xf32, #tpu.memory_space<vmem>>, vector<1x96xf32>
      %14 = vector.broadcast %13 : vector<1x96xf32> to vector<32x96xf32>
      %15 = arith.addf %12, %14 : vector<32x96xf32>
      %16 = arith.truncf %15 : vector<32x96xf32> to vector<32x96xbf16>
      %c0_14 = arith.constant 0 : index
      %c0_15 = arith.constant 0 : index
      %17 = vector.load %arg6[%c0_14, %c0_15] : memref<32x96xbf16, #tpu.memory_space<vmem>>, vector<32x96xbf16>
      tpu.vector_store %arg6[%c0_14, %c0_15], %16 {strides = array<i32>} : memref<32x96xbf16, #tpu.memory_space<vmem>>, vector<32x96xbf16>,
    } else {
    }
    return
  }
  func.func @transform_0(%arg0: i32, %arg1: i32, %arg2: i32) -> (i32, i32) {
    %c0_i32 = arith.constant 0 : i32
    return %arg0, %arg2 : i32, i32
  }
  func.func @transform_1(%arg0: i32, %arg1: i32, %arg2: i32) -> (i32, i32) {
    %c0_i32 = arith.constant 0 : i32
    return %arg2, %arg1 : i32, i32
  }
  func.func @transform_2(%arg0: i32, %arg1: i32, %arg2: i32) -> (i32, i32) {
    %c0_i32 = arith.constant 0 : i32
    %c0_i32_0 = arith.constant 0 : i32
    return %c0_i32, %arg1 : i32, i32
  }
  func.func @transform_3(%arg0: i32, %arg1: i32, %arg2: i32) -> (i32, i32) {
    %c0_i32 = arith.constant 0 : i32
    return %arg0, %arg1 : i32, i32
  }
}

module attributes {stable_mosaic.version = 11 : i64} {
  func.func @_layernorm_kernel(%arg0: i32, %arg1: memref<32x32xf32, #tpu.memory_space<vmem>>, %arg2: memref<1x32xf32, #tpu.memory_space<vmem>>, %arg3: memref<1x32xf32, #tpu.memory_space<vmem>>, %arg4: memref<32x32xf32, #tpu.memory_space<vmem>>, %arg5: memref<32x32xf32, #tpu.memory_space<vmem>>) attributes {dimension_semantics = [#tpu.dimension_semantics<parallel>], iteration_bounds = array<i64: 1>, scalar_prefetch = 0 : i64, scratch_operands = 0 : i64, tpu.core_type = #tpu.core_type<tc>, window_params = [{transform_indices = @transform_0, window_bounds = array<i64: 32, 32>}, {pipeline_mode = #tpu.pipeline_mode<synchronous>, transform_indices = @transform_1, window_bounds = array<i64: 1, 32>}, {pipeline_mode = #tpu.pipeline_mode<synchronous>, transform_indices = @transform_2, window_bounds = array<i64: 1, 32>}, {transform_indices = @transform_3, window_bounds = array<i64: 32, 32>}, {transform_indices = @transform_4, window_bounds = array<i64: 32, 32>}]} {
    %c0 = arith.constant 0 : index
    %c0_0 = arith.constant 0 : index
    %0 = vector.load %arg1[%c0, %c0_0] : memref<32x32xf32, #tpu.memory_space<vmem>>, vector<32x32xf32>
    %c0_1 = arith.constant 0 : index
    %c0_2 = arith.constant 0 : index
    %1 = vector.load %arg4[%c0_1, %c0_2] : memref<32x32xf32, #tpu.memory_space<vmem>>, vector<32x32xf32>
    %2 = arith.addf %0, %1 : vector<32x32xf32>
    %cst = arith.constant dense<0.000000e+00> : vector<32xf32>
    %3 = vector.multi_reduction <add>, %2, %cst [1] : vector<32x32xf32> to vector<32xf32>
    %4 = vector.shape_cast %3 : vector<32xf32> to vector<32x1xf32>
    %cst_3 = arith.constant 3.200000e+01 : f32
    %5 = vector.broadcast %cst_3 : f32 to vector<32x1xf32>
    %6 = arith.divf %4, %5 : vector<32x1xf32>
    %7 = vector.broadcast %6 : vector<32x1xf32> to vector<32x32xf32>
    %8 = arith.subf %2, %7 : vector<32x32xf32>
    %9 = arith.mulf %8, %8 : vector<32x32xf32>
    %cst_4 = arith.constant dense<0.000000e+00> : vector<32xf32>
    %10 = vector.multi_reduction <add>, %9, %cst_4 [1] : vector<32x32xf32> to vector<32xf32>
    %11 = vector.shape_cast %10 : vector<32xf32> to vector<32x1xf32>
    %cst_5 = arith.constant 3.200000e+01 : f32
    %12 = vector.broadcast %cst_5 : f32 to vector<32x1xf32>
    %13 = arith.divf %11, %12 : vector<32x1xf32>
    %14 = vector.broadcast %6 : vector<32x1xf32> to vector<32x32xf32>
    %15 = arith.subf %2, %14 : vector<32x32xf32>
    %cst_6 = arith.constant 9.99999974E-6 : f32
    %16 = vector.broadcast %cst_6 : f32 to vector<32x1xf32>
    %17 = arith.addf %13, %16 : vector<32x1xf32>
    %18 = math.rsqrt %17 : vector<32x1xf32>
    %19 = vector.broadcast %18 : vector<32x1xf32> to vector<32x32xf32>
    %20 = arith.mulf %15, %19 : vector<32x32xf32>
    %c0_7 = arith.constant 0 : index
    %c0_8 = arith.constant 0 : index
    %21 = vector.load %arg2[%c0_7, %c0_8] : memref<1x32xf32, #tpu.memory_space<vmem>>, vector<1x32xf32>
    %22 = vector.broadcast %21 : vector<1x32xf32> to vector<32x32xf32>
    %23 = arith.mulf %20, %22 : vector<32x32xf32>
    %c0_9 = arith.constant 0 : index
    %c0_10 = arith.constant 0 : index
    %24 = vector.load %arg3[%c0_9, %c0_10] : memref<1x32xf32, #tpu.memory_space<vmem>>, vector<1x32xf32>
    %25 = vector.broadcast %24 : vector<1x32xf32> to vector<32x32xf32>
    %26 = arith.addf %23, %25 : vector<32x32xf32>
    %c0_11 = arith.constant 0 : index
    %c0_12 = arith.constant 0 : index
    %27 = vector.load %arg5[%c0_11, %c0_12] : memref<32x32xf32, #tpu.memory_space<vmem>>, vector<32x32xf32>
    tpu.vector_store %arg5[%c0_11, %c0_12], %26 {strides = array<i32>} : memref<32x32xf32, #tpu.memory_space<vmem>>, vector<32x32xf32>,
    return
  }
  func.func @transform_0(%arg0: i32) -> (i32, i32) {
    %c0_i32 = arith.constant 0 : i32
    %c0_i32_0 = arith.constant 0 : i32
    return %arg0, %c0_i32 : i32, i32
  }
  func.func @transform_1(%arg0: i32) -> (i32, i32) {
    %c0_i32 = arith.constant 0 : i32
    %c0_i32_0 = arith.constant 0 : i32
    %c0_i32_1 = arith.constant 0 : i32
    return %c0_i32, %c0_i32_0 : i32, i32
  }
  func.func @transform_2(%arg0: i32) -> (i32, i32) {
    %c0_i32 = arith.constant 0 : i32
    %c0_i32_0 = arith.constant 0 : i32
    %c0_i32_1 = arith.constant 0 : i32
    return %c0_i32, %c0_i32_0 : i32, i32
  }
  func.func @transform_3(%arg0: i32) -> (i32, i32) {
    %c1_i32 = arith.constant 1 : i32
    %c0_i32 = arith.constant 0 : i32
    %0 = arith.cmpi eq, %c1_i32, %c0_i32 : i32
    %c1_i32_0 = arith.constant 1 : i32
    %1 = arith.select %0, %c1_i32_0, %c1_i32 : i32
    %2 = arith.remsi %arg0, %1 : i32
    %c0_i32_1 = arith.constant 0 : i32
    %3 = arith.cmpi ne, %2, %c0_i32_1 : i32
    %c0_i32_2 = arith.constant 0 : i32
    %4 = arith.cmpi slt, %2, %c0_i32_2 : i32
    %c0_i32_3 = arith.constant 0 : i32
    %5 = arith.cmpi slt, %1, %c0_i32_3 : i32
    %6 = arith.xori %4, %5 : i1
    %7 = arith.andi %6, %3 : i1
    %8 = arith.addi %2, %1 : i32
    %9 = arith.select %7, %8, %2 : i32
    %c0_i32_4 = arith.constant 0 : i32
    %c0_i32_5 = arith.constant 0 : i32
    return %9, %c0_i32_4 : i32, i32
  }
  func.func @transform_4(%arg0: i32) -> (i32, i32) {
    %c0_i32 = arith.constant 0 : i32
    %c0_i32_0 = arith.constant 0 : i32
    return %arg0, %c0_i32 : i32, i32
  }
}

module attributes {stable_mosaic.version = 11 : i64} {
  func.func @_attn_kernel(%arg0: i32, %arg1: i32, %arg2: memref<1x1x32x24xbf16, #tpu.memory_space<vmem>>, %arg3: memref<1x1x32x8xbf16, #tpu.memory_space<vmem>>) attributes {dimension_semantics = [#tpu.dimension_semantics<parallel>, #tpu.dimension_semantics<parallel>], iteration_bounds = array<i64: 1, 4>, scalar_prefetch = 0 : i64, scratch_operands = 0 : i64, tpu.core_type = #tpu.core_type<tc>, window_params = [{transform_indices = @transform_0, window_bounds = array<i64: 1, 1, 32, 24>}, {transform_indices = @transform_1, window_bounds = array<i64: 1, 1, 32, 8>}]} {
    %c0 = arith.constant 0 : index
    %c0_0 = arith.constant 0 : index
    %c0_1 = arith.constant 0 : index
    %c0_2 = arith.constant 0 : index
    %0 = vector.load %arg2[%c0, %c0_0, %c0_1, %c0_2] : memref<1x1x32x24xbf16, #tpu.memory_space<vmem>>, vector<1x1x32x24xbf16>
    %1 = vector.shape_cast %0 : vector<1x1x32x24xbf16> to vector<32x24xbf16>
    %2 = vector.extract_strided_slice %1 {offsets = [0, 0], sizes = [32, 8], strides = [1, 1]} : vector<32x24xbf16> to vector<32x8xbf16>
    %3 = vector.extract_strided_slice %1 {offsets = [0, 8], sizes = [32, 8], strides = [1, 1]} : vector<32x24xbf16> to vector<32x8xbf16>
    %4 = vector.extract_strided_slice %1 {offsets = [0, 16], sizes = [32, 8], strides = [1, 1]} : vector<32x24xbf16> to vector<32x8xbf16>
    %cst = arith.constant dense<0.000000e+00> : vector<32x32xf32>
    %5 = tpu.matmul %2, %3, %cst {dimension_numbers = #tpu.dot_dimension_numbers<[1], [1], [0], [0], [0, 0, 1, 0], [], []>} : vector<32x8xbf16>, vector<32x8xbf16>, vector<32x32xf32> -> vector<32x32xf32>
    %cst_3 = arith.constant dense<0xFF800000> : vector<32xf32>
    %6 = vector.multi_reduction <maximumf>, %5, %cst_3 [1] : vector<32x32xf32> to vector<32xf32>
    %7 = vector.shape_cast %6 : vector<32xf32> to vector<32x1xf32>
    %8 = vector.broadcast %7 : vector<32x1xf32> to vector<32x32xf32>
    %9 = arith.subf %5, %8 : vector<32x32xf32>
    %10 = math.exp %9 : vector<32x32xf32>
    %cst_4 = arith.constant dense<0.000000e+00> : vector<32xf32>
    %11 = vector.multi_reduction <add>, %10, %cst_4 [1] : vector<32x32xf32> to vector<32xf32>
    %12 = vector.shape_cast %11 : vector<32xf32> to vector<32x1xf32>
    %13 = tpu.reciprocal %12 {approx = true} : vector<32x1xf32> -> vector<32x1xf32>
    %14 = vector.broadcast %13 : vector<32x1xf32> to vector<32x32xf32>
    %15 = arith.mulf %10, %14 : vector<32x32xf32>
    %16 = arith.truncf %15 : vector<32x32xf32> to vector<32x32xbf16>
    %cst_5 = arith.constant dense<0.000000e+00> : vector<32x8xf32>
    %17 = tpu.matmul %16, %4, %cst_5 {dimension_numbers = #tpu.dot_dimension_numbers<[1], [0], [0], [1], [0, 0, 1, 1], [], []>} : vector<32x32xbf16>, vector<32x8xbf16>, vector<32x8xf32> -> vector<32x8xf32>
    %18 = arith.truncf %17 : vector<32x8xf32> to vector<32x8xbf16>
    %c0_6 = arith.constant 0 : index
    %c0_7 = arith.constant 0 : index
    %c0_8 = arith.constant 0 : index
    %c0_9 = arith.constant 0 : index
    %19 = vector.load %arg3[%c0_6, %c0_7, %c0_8, %c0_9] : memref<1x1x32x8xbf16, #tpu.memory_space<vmem>>, vector<1x1x32x8xbf16>
    %20 = vector.shape_cast %19 : vector<1x1x32x8xbf16> to vector<32x8xbf16>
    %21 = vector.shape_cast %18 : vector<32x8xbf16> to vector<1x1x32x8xbf16>
    tpu.vector_store %arg3[%c0_6, %c0_7, %c0_8, %c0_9], %21 {strides = array<i32>} : memref<1x1x32x8xbf16, #tpu.memory_space<vmem>>, vector<1x1x32x8xbf16>,
    return
  }
  func.func @transform_0(%arg0: i32, %arg1: i32) -> (i32, i32, i32, i32) {
    %c0_i32 = arith.constant 0 : i32
    %c0_i32_0 = arith.constant 0 : i32
    %c0_i32_1 = arith.constant 0 : i32
    return %arg0, %arg1, %c0_i32, %c0_i32_0 : i32, i32, i32, i32
  }
  func.func @transform_1(%arg0: i32, %arg1: i32) -> (i32, i32, i32, i32) {
    %c0_i32 = arith.constant 0 : i32
    %c0_i32_0 = arith.constant 0 : i32
    %c0_i32_1 = arith.constant 0 : i32
    return %arg0, %arg1, %c0_i32, %c0_i32_0 : i32, i32, i32, i32
  }
}

module attributes {stable_mosaic.version = 11 : i64} {
  func.func @_linear_kernel(%arg0: i32, %arg1: i32, %arg2: i32, %arg3: memref<32x32xbf16, #tpu.memory_space<vmem>>, %arg4: memref<32x32xbf16, #tpu.memory_space<vmem>>, %arg5: memref<1x32xf32, #tpu.memory_space<vmem>>, %arg6: memref<32x32xbf16, #tpu.memory_space<vmem>>, %arg7: memref<32x32xf32, #tpu.memory_space<vmem>>) attributes {dimension_semantics = [#tpu.dimension_semantics<parallel>, #tpu.dimension_semantics<parallel>, #tpu.dimension_semantics<arbitrary>], iteration_bounds = array<i64: 1, 1, 1>, scalar_prefetch = 0 : i64, scratch_operands = 1 : i64, tpu.core_type = #tpu.core_type<tc>, window_params = [{transform_indices = @transform_0, window_bounds = array<i64: 32, 32>}, {transform_indices = @transform_1, window_bounds = array<i64: 32, 32>}, {transform_indices = @transform_2, window_bounds = array<i64: 1, 32>}, {transform_indices = @transform_3, window_bounds = array<i64: 32, 32>}]} {
    %c0_i32 = arith.constant 0 : i32
    %0 = arith.cmpi eq, %arg2, %c0_i32 : i32
    %1 = arith.extui %0 : i1 to i32
    %c0_i32_0 = arith.constant 0 : i32
    %2 = arith.cmpi ne, %1, %c0_i32_0 : i32
    scf.if %2 {
      %cst_10 = arith.constant 0.000000e+00 : f32
      %12 = vector.broadcast %cst_10 : f32 to vector<32x32xf32>
      %c0_11 = arith.constant 0 : index
      %c0_12 = arith.constant 0 : index
      %13 = vector.load %arg7[%c0_11, %c0_12] : memref<32x32xf32, #tpu.memory_space<vmem>>, vector<32x32xf32>
      tpu.vector_store %arg7[%c0_11, %c0_12], %12 {strides = array<i32>} : memref<32x32xf32, #tpu.memory_space<vmem>>, vector<32x32xf32>,
    } else {
    }
    %c0 = arith.constant 0 : index
    %c0_1 = arith.constant 0 : index
    %3 = vector.load %arg7[%c0, %c0_1] : memref<32x32xf32, #tpu.memory_space<vmem>>, vector<32x32xf32>
    %c0_2 = arith.constant 0 : index
    %c0_3 = arith.constant 0 : index
    %4 = vector.load %arg3[%c0_2, %c0_3] : memref<32x32xbf16, #tpu.memory_space<vmem>>, vector<32x32xbf16>
    %c0_4 = arith.constant 0 : index
    %c0_5 = arith.constant 0 : index
    %5 = vector.load %arg4[%c0_4, %c0_5] : memref<32x32xbf16, #tpu.memory_space<vmem>>, vector<32x32xbf16>
    %cst = arith.constant dense<0.000000e+00> : vector<32x32xf32>
    %6 = tpu.matmul %4, %5, %cst {dimension_numbers = #tpu.dot_dimension_numbers<[1], [0], [0], [1], [0, 0, 1, 1], [], []>} : vector<32x32xbf16>, vector<32x32xbf16>, vector<32x32xf32> -> vector<32x32xf32>
    %7 = arith.addf %3, %6 : vector<32x32xf32>
    %c0_6 = arith.constant 0 : index
    %c0_7 = arith.constant 0 : index
    %8 = vector.load %arg7[%c0_6, %c0_7] : memref<32x32xf32, #tpu.memory_space<vmem>>, vector<32x32xf32>
    tpu.vector_store %arg7[%c0_6, %c0_7], %7 {strides = array<i32>} : memref<32x32xf32, #tpu.memory_space<vmem>>, vector<32x32xf32>,
    %c0_i32_8 = arith.constant 0 : i32
    %9 = arith.cmpi eq, %arg2, %c0_i32_8 : i32
    %10 = arith.extui %9 : i1 to i32
    %c0_i32_9 = arith.constant 0 : i32
    %11 = arith.cmpi ne, %10, %c0_i32_9 : i32
    scf.if %11 {
      %c0_10 = arith.constant 0 : index
      %c0_11 = arith.constant 0 : index
      %12 = vector.load %arg7[%c0_10, %c0_11] : memref<32x32xf32, #tpu.memory_space<vmem>>, vector<32x32xf32>
      %c0_12 = arith.constant 0 : index
      %c0_13 = arith.constant 0 : index
      %13 = vector.load %arg5[%c0_12, %c0_13] : memref<1x32xf32, #tpu.memory_space<vmem>>, vector<1x32xf32>
      %14 = vector.broadcast %13 : vector<1x32xf32> to vector<32x32xf32>
      %15 = arith.addf %12, %14 : vector<32x32xf32>
      %16 = arith.truncf %15 : vector<32x32xf32> to vector<32x32xbf16>
      %c0_14 = arith.constant 0 : index
      %c0_15 = arith.constant 0 : index
      %17 = vector.load %arg6[%c0_14, %c0_15] : memref<32x32xbf16, #tpu.memory_space<vmem>>, vector<32x32xbf16>
      tpu.vector_store %arg6[%c0_14, %c0_15], %16 {strides = array<i32>} : memref<32x32xbf16, #tpu.memory_space<vmem>>, vector<32x32xbf16>,
    } else {
    }
    return
  }
  func.func @transform_0(%arg0: i32, %arg1: i32, %arg2: i32) -> (i32, i32) {
    %c0_i32 = arith.constant 0 : i32
    return %arg0, %arg2 : i32, i32
  }
  func.func @transform_1(%arg0: i32, %arg1: i32, %arg2: i32) -> (i32, i32) {
    %c0_i32 = arith.constant 0 : i32
    return %arg2, %arg1 : i32, i32
  }
  func.func @transform_2(%arg0: i32, %arg1: i32, %arg2: i32) -> (i32, i32) {
    %c0_i32 = arith.constant 0 : i32
    %c0_i32_0 = arith.constant 0 : i32
    return %c0_i32, %arg1 : i32, i32
  }
  func.func @transform_3(%arg0: i32, %arg1: i32, %arg2: i32) -> (i32, i32) {
    %c0_i32 = arith.constant 0 : i32
    return %arg0, %arg1 : i32, i32
  }
}

module attributes {stable_mosaic.version = 11 : i64} {
  func.func @_linear_kernel(%arg0: i32, %arg1: i32, %arg2: i32, %arg3: memref<32x32xbf16, #tpu.memory_space<vmem>>, %arg4: memref<32x32xbf16, #tpu.memory_space<vmem>>, %arg5: memref<1x32xf32, #tpu.memory_space<vmem>>, %arg6: memref<32x32xf32, #tpu.memory_space<vmem>>, %arg7: memref<32x32xf32, #tpu.memory_space<vmem>>, %arg8: memref<32x32xf32, #tpu.memory_space<vmem>>) attributes {dimension_semantics = [#tpu.dimension_semantics<parallel>, #tpu.dimension_semantics<parallel>, #tpu.dimension_semantics<arbitrary>], iteration_bounds = array<i64: 1, 1, 1>, scalar_prefetch = 0 : i64, scratch_operands = 1 : i64, tpu.core_type = #tpu.core_type<tc>, window_params = [{transform_indices = @transform_0, window_bounds = array<i64: 32, 32>}, {transform_indices = @transform_1, window_bounds = array<i64: 32, 32>}, {transform_indices = @transform_2, window_bounds = array<i64: 1, 32>}, {transform_indices = @transform_3, window_bounds = array<i64: 32, 32>}, {transform_indices = @transform_4, window_bounds = array<i64: 32, 32>}]} {
    %c0_i32 = arith.constant 0 : i32
    %0 = arith.cmpi eq, %arg2, %c0_i32 : i32
    %1 = arith.extui %0 : i1 to i32
    %c0_i32_0 = arith.constant 0 : i32
    %2 = arith.cmpi ne, %1, %c0_i32_0 : i32
    scf.if %2 {
      %cst_10 = arith.constant 0.000000e+00 : f32
      %12 = vector.broadcast %cst_10 : f32 to vector<32x32xf32>
      %c0_11 = arith.constant 0 : index
      %c0_12 = arith.constant 0 : index
      %13 = vector.load %arg8[%c0_11, %c0_12] : memref<32x32xf32, #tpu.memory_space<vmem>>, vector<32x32xf32>
      tpu.vector_store %arg8[%c0_11, %c0_12], %12 {strides = array<i32>} : memref<32x32xf32, #tpu.memory_space<vmem>>, vector<32x32xf32>,
    } else {
    }
    %c0 = arith.constant 0 : index
    %c0_1 = arith.constant 0 : index
    %3 = vector.load %arg8[%c0, %c0_1] : memref<32x32xf32, #tpu.memory_space<vmem>>, vector<32x32xf32>
    %c0_2 = arith.constant 0 : index
    %c0_3 = arith.constant 0 : index
    %4 = vector.load %arg3[%c0_2, %c0_3] : memref<32x32xbf16, #tpu.memory_space<vmem>>, vector<32x32xbf16>
    %c0_4 = arith.constant 0 : index
    %c0_5 = arith.constant 0 : index
    %5 = vector.load %arg4[%c0_4, %c0_5] : memref<32x32xbf16, #tpu.memory_space<vmem>>, vector<32x32xbf16>
    %cst = arith.constant dense<0.000000e+00> : vector<32x32xf32>
    %6 = tpu.matmul %4, %5, %cst {dimension_numbers = #tpu.dot_dimension_numbers<[1], [0], [0], [1], [0, 0, 1, 1], [], []>} : vector<32x32xbf16>, vector<32x32xbf16>, vector<32x32xf32> -> vector<32x32xf32>
    %7 = arith.addf %3, %6 : vector<32x32xf32>
    %c0_6 = arith.constant 0 : index
    %c0_7 = arith.constant 0 : index
    %8 = vector.load %arg8[%c0_6, %c0_7] : memref<32x32xf32, #tpu.memory_space<vmem>>, vector<32x32xf32>
    tpu.vector_store %arg8[%c0_6, %c0_7], %7 {strides = array<i32>} : memref<32x32xf32, #tpu.memory_space<vmem>>, vector<32x32xf32>,
    %c0_i32_8 = arith.constant 0 : i32
    %9 = arith.cmpi eq, %arg2, %c0_i32_8 : i32
    %10 = arith.extui %9 : i1 to i32
    %c0_i32_9 = arith.constant 0 : i32
    %11 = arith.cmpi ne, %10, %c0_i32_9 : i32
    scf.if %11 {
      %c0_10 = arith.constant 0 : index
      %c0_11 = arith.constant 0 : index
      %12 = vector.load %arg8[%c0_10, %c0_11] : memref<32x32xf32, #tpu.memory_space<vmem>>, vector<32x32xf32>
      %c0_12 = arith.constant 0 : index
      %c0_13 = arith.constant 0 : index
      %13 = vector.load %arg5[%c0_12, %c0_13] : memref<1x32xf32, #tpu.memory_space<vmem>>, vector<1x32xf32>
      %14 = vector.broadcast %13 : vector<1x32xf32> to vector<32x32xf32>
      %15 = arith.addf %12, %14 : vector<32x32xf32>
      %c0_14 = arith.constant 0 : index
      %c0_15 = arith.constant 0 : index
      %16 = vector.load %arg6[%c0_14, %c0_15] : memref<32x32xf32, #tpu.memory_space<vmem>>, vector<32x32xf32>
      %17 = arith.addf %15, %16 : vector<32x32xf32>
      %c0_16 = arith.constant 0 : index
      %c0_17 = arith.constant 0 : index
      %18 = vector.load %arg7[%c0_16, %c0_17] : memref<32x32xf32, #tpu.memory_space<vmem>>, vector<32x32xf32>
      tpu.vector_store %arg7[%c0_16, %c0_17], %17 {strides = array<i32>} : memref<32x32xf32, #tpu.memory_space<vmem>>, vector<32x32xf32>,
    } else {
    }
    return
  }
  func.func @transform_0(%arg0: i32, %arg1: i32, %arg2: i32) -> (i32, i32) {
    %c0_i32 = arith.constant 0 : i32
    return %arg0, %arg2 : i32, i32
  }
  func.func @transform_1(%arg0: i32, %arg1: i32, %arg2: i32) -> (i32, i32) {
    %c0_i32 = arith.constant 0 : i32
    return %arg2, %arg1 : i32, i32
  }
  func.func @transform_2(%arg0: i32, %arg1: i32, %arg2: i32) -> (i32, i32) {
    %c0_i32 = arith.constant 0 : i32
    %c0_i32_0 = arith.constant 0 : i32
    return %c0_i32, %arg1 : i32, i32
  }
  func.func @transform_3(%arg0: i32, %arg1: i32, %arg2: i32) -> (i32, i32) {
    %c0_i32 = arith.constant 0 : i32
    return %arg0, %arg1 : i32, i32
  }
  func.func @transform_4(%arg0: i32, %arg1: i32, %arg2: i32) -> (i32, i32) {
    %c0_i32 = arith.constant 0 : i32
    return %arg0, %arg1 : i32, i32
  }
}

module attributes {stable_mosaic.version = 11 : i64} {
  func.func @_linear_kernel(%arg0: i32, %arg1: i32, %arg2: i32, %arg3: memref<32x32xbf16, #tpu.memory_space<vmem>>, %arg4: memref<32x64xbf16, #tpu.memory_space<vmem>>, %arg5: memref<1x64xf32, #tpu.memory_space<vmem>>, %arg6: memref<32x64xbf16, #tpu.memory_space<vmem>>, %arg7: memref<32x64xf32, #tpu.memory_space<vmem>>) attributes {dimension_semantics = [#tpu.dimension_semantics<parallel>, #tpu.dimension_semantics<parallel>, #tpu.dimension_semantics<arbitrary>], iteration_bounds = array<i64: 1, 1, 1>, scalar_prefetch = 0 : i64, scratch_operands = 1 : i64, tpu.core_type = #tpu.core_type<tc>, window_params = [{transform_indices = @transform_0, window_bounds = array<i64: 32, 32>}, {transform_indices = @transform_1, window_bounds = array<i64: 32, 64>}, {transform_indices = @transform_2, window_bounds = array<i64: 1, 64>}, {transform_indices = @transform_3, window_bounds = array<i64: 32, 64>}]} {
    %c0_i32 = arith.constant 0 : i32
    %0 = arith.cmpi eq, %arg2, %c0_i32 : i32
    %1 = arith.extui %0 : i1 to i32
    %c0_i32_0 = arith.constant 0 : i32
    %2 = arith.cmpi ne, %1, %c0_i32_0 : i32
    scf.if %2 {
      %cst_10 = arith.constant 0.000000e+00 : f32
      %12 = vector.broadcast %cst_10 : f32 to vector<32x64xf32>
      %c0_11 = arith.constant 0 : index
      %c0_12 = arith.constant 0 : index
      %13 = vector.load %arg7[%c0_11, %c0_12] : memref<32x64xf32, #tpu.memory_space<vmem>>, vector<32x64xf32>
      tpu.vector_store %arg7[%c0_11, %c0_12], %12 {strides = array<i32>} : memref<32x64xf32, #tpu.memory_space<vmem>>, vector<32x64xf32>,
    } else {
    }
    %c0 = arith.constant 0 : index
    %c0_1 = arith.constant 0 : index
    %3 = vector.load %arg7[%c0, %c0_1] : memref<32x64xf32, #tpu.memory_space<vmem>>, vector<32x64xf32>
    %c0_2 = arith.constant 0 : index
    %c0_3 = arith.constant 0 : index
    %4 = vector.load %arg3[%c0_2, %c0_3] : memref<32x32xbf16, #tpu.memory_space<vmem>>, vector<32x32xbf16>
    %c0_4 = arith.constant 0 : index
    %c0_5 = arith.constant 0 : index
    %5 = vector.load %arg4[%c0_4, %c0_5] : memref<32x64xbf16, #tpu.memory_space<vmem>>, vector<32x64xbf16>
    %cst = arith.constant dense<0.000000e+00> : vector<32x64xf32>
    %6 = tpu.matmul %4, %5, %cst {dimension_numbers = #tpu.dot_dimension_numbers<[1], [0], [0], [1], [0, 0, 1, 1], [], []>} : vector<32x32xbf16>, vector<32x64xbf16>, vector<32x64xf32> -> vector<32x64xf32>
    %7 = arith.addf %3, %6 : vector<32x64xf32>
    %c0_6 = arith.constant 0 : index
    %c0_7 = arith.constant 0 : index
    %8 = vector.load %arg7[%c0_6, %c0_7] : memref<32x64xf32, #tpu.memory_space<vmem>>, vector<32x64xf32>
    tpu.vector_store %arg7[%c0_6, %c0_7], %7 {strides = array<i32>} : memref<32x64xf32, #tpu.memory_space<vmem>>, vector<32x64xf32>,
    %c0_i32_8 = arith.constant 0 : i32
    %9 = arith.cmpi eq, %arg2, %c0_i32_8 : i32
    %10 = arith.extui %9 : i1 to i32
    %c0_i32_9 = arith.constant 0 : i32
    %11 = arith.cmpi ne, %10, %c0_i32_9 : i32
    scf.if %11 {
      %c0_10 = arith.constant 0 : index
      %c0_11 = arith.constant 0 : index
      %12 = vector.load %arg7[%c0_10, %c0_11] : memref<32x64xf32, #tpu.memory_space<vmem>>, vector<32x64xf32>
      %c0_12 = arith.constant 0 : index
      %c0_13 = arith.constant 0 : index
      %13 = vector.load %arg5[%c0_12, %c0_13] : memref<1x64xf32, #tpu.memory_space<vmem>>, vector<1x64xf32>
      %14 = vector.broadcast %13 : vector<1x64xf32> to vector<32x64xf32>
      %15 = arith.addf %12, %14 : vector<32x64xf32>
      %16 = arith.truncf %15 : vector<32x64xf32> to vector<32x64xbf16>
      %c0_14 = arith.constant 0 : index
      %c0_15 = arith.constant 0 : index
      %17 = vector.load %arg6[%c0_14, %c0_15] : memref<32x64xbf16, #tpu.memory_space<vmem>>, vector<32x64xbf16>
      tpu.vector_store %arg6[%c0_14, %c0_15], %16 {strides = array<i32>} : memref<32x64xbf16, #tpu.memory_space<vmem>>, vector<32x64xbf16>,
    } else {
    }
    return
  }
  func.func @transform_0(%arg0: i32, %arg1: i32, %arg2: i32) -> (i32, i32) {
    %c0_i32 = arith.constant 0 : i32
    return %arg0, %arg2 : i32, i32
  }
  func.func @transform_1(%arg0: i32, %arg1: i32, %arg2: i32) -> (i32, i32) {
    %c0_i32 = arith.constant 0 : i32
    return %arg2, %arg1 : i32, i32
  }
  func.func @transform_2(%arg0: i32, %arg1: i32, %arg2: i32) -> (i32, i32) {
    %c0_i32 = arith.constant 0 : i32
    %c0_i32_0 = arith.constant 0 : i32
    return %c0_i32, %arg1 : i32, i32
  }
  func.func @transform_3(%arg0: i32, %arg1: i32, %arg2: i32) -> (i32, i32) {
    %c0_i32 = arith.constant 0 : i32
    return %arg0, %arg1 : i32, i32
  }
}

module attributes {stable_mosaic.version = 11 : i64} {
  func.func @_attn_kernel(%arg0: i32, %arg1: i32, %arg2: memref<1x1x32x8xbf16, #tpu.memory_space<vmem>>, %arg3: memref<1x1x32x16xbf16, #tpu.memory_space<vmem>>, %arg4: memref<1x32x32xf32, #tpu.memory_space<vmem>>, %arg5: memref<1x1x32x8xbf16, #tpu.memory_space<vmem>>, %arg6: memref<1x1x32x32xf32, #tpu.memory_space<vmem>>) attributes {dimension_semantics = [#tpu.dimension_semantics<parallel>, #tpu.dimension_semantics<parallel>], iteration_bounds = array<i64: 1, 4>, scalar_prefetch = 0 : i64, scratch_operands = 0 : i64, tpu.core_type = #tpu.core_type<tc>, window_params = [{transform_indices = @transform_0, window_bounds = array<i64: 1, 1, 32, 8>}, {transform_indices = @transform_1, window_bounds = array<i64: 1, 1, 32, 16>}, {pipeline_mode = #tpu.pipeline_mode<synchronous>, transform_indices = @transform_2, window_bounds = array<i64: 1, 32, 32>}, {transform_indices = @transform_3, window_bounds = array<i64: 1, 1, 32, 8>}, {transform_indices = @transform_4, window_bounds = array<i64: 1, 1, 32, 32>}]} {
    %c0 = arith.constant 0 : index
    %c0_0 = arith.constant 0 : index
    %c0_1 = arith.constant 0 : index
    %c0_2 = arith.constant 0 : index
    %0 = vector.load %arg2[%c0, %c0_0, %c0_1, %c0_2] : memref<1x1x32x8xbf16, #tpu.memory_space<vmem>>, vector<1x1x32x8xbf16>
    %1 = vector.shape_cast %0 : vector<1x1x32x8xbf16> to vector<32x8xbf16>
    %c0_3 = arith.constant 0 : index
    %c0_4 = arith.constant 0 : index
    %c0_5 = arith.constant 0 : index
    %c0_6 = arith.constant 0 : index
    %2 = vector.load %arg3[%c0_3, %c0_4, %c0_5, %c0_6] : memref<1x1x32x16xbf16, #tpu.memory_space<vmem>>, vector<1x1x32x16xbf16>
    %3 = vector.shape_cast %2 : vector<1x1x32x16xbf16> to vector<32x16xbf16>
    %4 = vector.extract_strided_slice %3 {offsets = [0, 0], sizes = [32, 8], strides = [1, 1]} : vector<32x16xbf16> to vector<32x8xbf16>
    %5 = vector.extract_strided_slice %3 {offsets = [0, 8], sizes = [32, 8], strides = [1, 1]} : vector<32x16xbf16> to vector<32x8xbf16>
    %cst = arith.constant dense<0.000000e+00> : vector<32x32xf32>
    %6 = tpu.matmul %1, %4, %cst {dimension_numbers = #tpu.dot_dimension_numbers<[1], [1], [0], [0], [0, 0, 1, 0], [], []>} : vector<32x8xbf16>, vector<32x8xbf16>, vector<32x32xf32> -> vector<32x32xf32>
    %c0_7 = arith.constant 0 : index
    %c0_8 = arith.constant 0 : index
    %c0_9 = arith.constant 0 : index
    %7 = vector.load %arg4[%c0_7, %c0_8, %c0_9] : memref<1x32x32xf32, #tpu.memory_space<vmem>>, vector<1x32x32xf32>
    %8 = vector.shape_cast %7 : vector<1x32x32xf32> to vector<32x32xf32>
    %9 = arith.addf %6, %8 : vector<32x32xf32>
    %cst_10 = arith.constant dense<0xFF800000> : vector<32xf32>
    %10 = vector.multi_reduction <maximumf>, %9, %cst_10 [1] : vector<32x32xf32> to vector<32xf32>
    %11 = vector.shape_cast %10 : vector<32xf32> to vector<32x1xf32>
    %12 = vector.broadcast %11 : vector<32x1xf32> to vector<32x32xf32>
    %13 = arith.subf %9, %12 : vector<32x32xf32>
    %14 = math.exp %13 : vector<32x32xf32>
    %cst_11 = arith.constant dense<0.000000e+00> : vector<32xf32>
    %15 = vector.multi_reduction <add>, %14, %cst_11 [1] : vector<32x32xf32> to vector<32xf32>
    %16 = vector.shape_cast %15 : vector<32xf32> to vector<32x1xf32>
    %17 = tpu.reciprocal %16 {approx = true} : vector<32x1xf32> -> vector<32x1xf32>
    %18 = vector.broadcast %17 : vector<32x1xf32> to vector<32x32xf32>
    %19 = arith.mulf %14, %18 : vector<32x32xf32>
    %20 = arith.truncf %19 : vector<32x32xf32> to vector<32x32xbf16>
    %cst_12 = arith.constant dense<0.000000e+00> : vector<32x8xf32>
    %21 = tpu.matmul %20, %5, %cst_12 {dimension_numbers = #tpu.dot_dimension_numbers<[1], [0], [0], [1], [0, 0, 1, 1], [], []>} : vector<32x32xbf16>, vector<32x8xbf16>, vector<32x8xf32> -> vector<32x8xf32>
    %22 = arith.truncf %21 : vector<32x8xf32> to vector<32x8xbf16>
    %c0_13 = arith.constant 0 : index
    %c0_14 = arith.constant 0 : index
    %c0_15 = arith.constant 0 : index
    %c0_16 = arith.constant 0 : index
    %23 = vector.load %arg5[%c0_13, %c0_14, %c0_15, %c0_16] : memref<1x1x32x8xbf16, #tpu.memory_space<vmem>>, vector<1x1x32x8xbf16>
    %24 = vector.shape_cast %23 : vector<1x1x32x8xbf16> to vector<32x8xbf16>
    %25 = vector.shape_cast %22 : vector<32x8xbf16> to vector<1x1x32x8xbf16>
    tpu.vector_store %arg5[%c0_13, %c0_14, %c0_15, %c0_16], %25 {strides = array<i32>} : memref<1x1x32x8xbf16, #tpu.memory_space<vmem>>, vector<1x1x32x8xbf16>,
    %c0_17 = arith.constant 0 : index
    %c0_18 = arith.constant 0 : index
    %c0_19 = arith.constant 0 : index
    %c0_20 = arith.constant 0 : index
    %26 = vector.load %arg6[%c0_17, %c0_18, %c0_19, %c0_20] : memref<1x1x32x32xf32, #tpu.memory_space<vmem>>, vector<1x1x32x32xf32>
    %27 = vector.shape_cast %26 : vector<1x1x32x32xf32> to vector<32x32xf32>
    %28 = vector.shape_cast %19 : vector<32x32xf32> to vector<1x1x32x32xf32>
    tpu.vector_store %arg6[%c0_17, %c0_18, %c0_19, %c0_20], %28 {strides = array<i32>} : memref<1x1x32x32xf32, #tpu.memory_space<vmem>>, vector<1x1x32x32xf32>,
    return
  }
  func.func @transform_0(%arg0: i32, %arg1: i32) -> (i32, i32, i32, i32) {
    %c0_i32 = arith.constant 0 : i32
    %c0_i32_0 = arith.constant 0 : i32
    %c0_i32_1 = arith.constant 0 : i32
    return %arg0, %arg1, %c0_i32, %c0_i32_0 : i32, i32, i32, i32
  }
  func.func @transform_1(%arg0: i32, %arg1: i32) -> (i32, i32, i32, i32) {
    %c0_i32 = arith.constant 0 : i32
    %c0_i32_0 = arith.constant 0 : i32
    %c0_i32_1 = arith.constant 0 : i32
    return %arg0, %arg1, %c0_i32, %c0_i32_0 : i32, i32, i32, i32
  }
  func.func @transform_2(%arg0: i32, %arg1: i32) -> (i32, i32, i32) {
    %c0_i32 = arith.constant 0 : i32
    %c0_i32_0 = arith.constant 0 : i32
    %c0_i32_1 = arith.constant 0 : i32
    %c0_i32_2 = arith.constant 0 : i32
    return %c0_i32, %c0_i32_0, %c0_i32_1 : i32, i32, i32
  }
  func.func @transform_3(%arg0: i32, %arg1: i32) -> (i32, i32, i32, i32) {
    %c0_i32 = arith.constant 0 : i32
    %c0_i32_0 = arith.constant 0 : i32
    %c0_i32_1 = arith.constant 0 : i32
    return %arg0, %arg1, %c0_i32, %c0_i32_0 : i32, i32, i32, i32
  }
  func.func @transform_4(%arg0: i32, %arg1: i32) -> (i32, i32, i32, i32) {
    %c0_i32 = arith.constant 0 : i32
    %c0_i32_0 = arith.constant 0 : i32
    %c0_i32_1 = arith.constant 0 : i32
    return %arg0, %arg1, %c0_i32, %c0_i32_0 : i32, i32, i32, i32
  }
}

module attributes {stable_mosaic.version = 11 : i64} {
  func.func @_linear_kernel(%arg0: i32, %arg1: i32, %arg2: i32, %arg3: memref<32x32xbf16, #tpu.memory_space<vmem>>, %arg4: memref<32x64xbf16, #tpu.memory_space<vmem>>, %arg5: memref<1x64xf32, #tpu.memory_space<vmem>>, %arg6: memref<32x64xbf16, #tpu.memory_space<vmem>>, %arg7: memref<32x64xf32, #tpu.memory_space<vmem>>) attributes {dimension_semantics = [#tpu.dimension_semantics<parallel>, #tpu.dimension_semantics<parallel>, #tpu.dimension_semantics<arbitrary>], iteration_bounds = array<i64: 1, 1, 1>, scalar_prefetch = 0 : i64, scratch_operands = 1 : i64, tpu.core_type = #tpu.core_type<tc>, window_params = [{transform_indices = @transform_0, window_bounds = array<i64: 32, 32>}, {transform_indices = @transform_1, window_bounds = array<i64: 32, 64>}, {transform_indices = @transform_2, window_bounds = array<i64: 1, 64>}, {transform_indices = @transform_3, window_bounds = array<i64: 32, 64>}]} {
    %c0_i32 = arith.constant 0 : i32
    %0 = arith.cmpi eq, %arg2, %c0_i32 : i32
    %1 = arith.extui %0 : i1 to i32
    %c0_i32_0 = arith.constant 0 : i32
    %2 = arith.cmpi ne, %1, %c0_i32_0 : i32
    scf.if %2 {
      %cst_10 = arith.constant 0.000000e+00 : f32
      %12 = vector.broadcast %cst_10 : f32 to vector<32x64xf32>
      %c0_11 = arith.constant 0 : index
      %c0_12 = arith.constant 0 : index
      %13 = vector.load %arg7[%c0_11, %c0_12] : memref<32x64xf32, #tpu.memory_space<vmem>>, vector<32x64xf32>
      tpu.vector_store %arg7[%c0_11, %c0_12], %12 {strides = array<i32>} : memref<32x64xf32, #tpu.memory_space<vmem>>, vector<32x64xf32>,
    } else {
    }
    %c0 = arith.constant 0 : index
    %c0_1 = arith.constant 0 : index
    %3 = vector.load %arg7[%c0, %c0_1] : memref<32x64xf32, #tpu.memory_space<vmem>>, vector<32x64xf32>
    %c0_2 = arith.constant 0 : index
    %c0_3 = arith.constant 0 : index
    %4 = vector.load %arg3[%c0_2, %c0_3] : memref<32x32xbf16, #tpu.memory_space<vmem>>, vector<32x32xbf16>
    %c0_4 = arith.constant 0 : index
    %c0_5 = arith.constant 0 : index
    %5 = vector.load %arg4[%c0_4, %c0_5] : memref<32x64xbf16, #tpu.memory_space<vmem>>, vector<32x64xbf16>
    %cst = arith.constant dense<0.000000e+00> : vector<32x64xf32>
    %6 = tpu.matmul %4, %5, %cst {dimension_numbers = #tpu.dot_dimension_numbers<[1], [0], [0], [1], [0, 0, 1, 1], [], []>} : vector<32x32xbf16>, vector<32x64xbf16>, vector<32x64xf32> -> vector<32x64xf32>
    %7 = arith.addf %3, %6 : vector<32x64xf32>
    %c0_6 = arith.constant 0 : index
    %c0_7 = arith.constant 0 : index
    %8 = vector.load %arg7[%c0_6, %c0_7] : memref<32x64xf32, #tpu.memory_space<vmem>>, vector<32x64xf32>
    tpu.vector_store %arg7[%c0_6, %c0_7], %7 {strides = array<i32>} : memref<32x64xf32, #tpu.memory_space<vmem>>, vector<32x64xf32>,
    %c0_i32_8 = arith.constant 0 : i32
    %9 = arith.cmpi eq, %arg2, %c0_i32_8 : i32
    %10 = arith.extui %9 : i1 to i32
    %c0_i32_9 = arith.constant 0 : i32
    %11 = arith.cmpi ne, %10, %c0_i32_9 : i32
    scf.if %11 {
      %c0_10 = arith.constant 0 : index
      %c0_11 = arith.constant 0 : index
      %12 = vector.load %arg7[%c0_10, %c0_11] : memref<32x64xf32, #tpu.memory_space<vmem>>, vector<32x64xf32>
      %c0_12 = arith.constant 0 : index
      %c0_13 = arith.constant 0 : index
      %13 = vector.load %arg5[%c0_12, %c0_13] : memref<1x64xf32, #tpu.memory_space<vmem>>, vector<1x64xf32>
      %14 = vector.broadcast %13 : vector<1x64xf32> to vector<32x64xf32>
      %15 = arith.addf %12, %14 : vector<32x64xf32>
      %cst_14 = arith.constant 0.000000e+00 : f32
      %16 = vector.broadcast %cst_14 : f32 to vector<32x64xf32>
      %17 = arith.maximumf %15, %16 : vector<32x64xf32>
      %18 = arith.truncf %17 : vector<32x64xf32> to vector<32x64xbf16>
      %c0_15 = arith.constant 0 : index
      %c0_16 = arith.constant 0 : index
      %19 = vector.load %arg6[%c0_15, %c0_16] : memref<32x64xbf16, #tpu.memory_space<vmem>>, vector<32x64xbf16>
      tpu.vector_store %arg6[%c0_15, %c0_16], %18 {strides = array<i32>} : memref<32x64xbf16, #tpu.memory_space<vmem>>, vector<32x64xbf16>,
    } else {
    }
    return
  }
  func.func @transform_0(%arg0: i32, %arg1: i32, %arg2: i32) -> (i32, i32) {
    %c0_i32 = arith.constant 0 : i32
    return %arg0, %arg2 : i32, i32
  }
  func.func @transform_1(%arg0: i32, %arg1: i32, %arg2: i32) -> (i32, i32) {
    %c0_i32 = arith.constant 0 : i32
    return %arg2, %arg1 : i32, i32
  }
  func.func @transform_2(%arg0: i32, %arg1: i32, %arg2: i32) -> (i32, i32) {
    %c0_i32 = arith.constant 0 : i32
    %c0_i32_0 = arith.constant 0 : i32
    return %c0_i32, %arg1 : i32, i32
  }
  func.func @transform_3(%arg0: i32, %arg1: i32, %arg2: i32) -> (i32, i32) {
    %c0_i32 = arith.constant 0 : i32
    return %arg0, %arg1 : i32, i32
  }
}

module attributes {stable_mosaic.version = 11 : i64} {
  func.func @_linear_kernel(%arg0: i32, %arg1: i32, %arg2: i32, %arg3: memref<32x64xbf16, #tpu.memory_space<vmem>>, %arg4: memref<64x32xbf16, #tpu.memory_space<vmem>>, %arg5: memref<1x32xf32, #tpu.memory_space<vmem>>, %arg6: memref<32x32xf32, #tpu.memory_space<vmem>>, %arg7: memref<32x32xf32, #tpu.memory_space<vmem>>, %arg8: memref<32x32xf32, #tpu.memory_space<vmem>>) attributes {dimension_semantics = [#tpu.dimension_semantics<parallel>, #tpu.dimension_semantics<parallel>, #tpu.dimension_semantics<arbitrary>], iteration_bounds = array<i64: 1, 1, 1>, scalar_prefetch = 0 : i64, scratch_operands = 1 : i64, tpu.core_type = #tpu.core_type<tc>, window_params = [{transform_indices = @transform_0, window_bounds = array<i64: 32, 64>}, {transform_indices = @transform_1, window_bounds = array<i64: 64, 32>}, {transform_indices = @transform_2, window_bounds = array<i64: 1, 32>}, {transform_indices = @transform_3, window_bounds = array<i64: 32, 32>}, {transform_indices = @transform_4, window_bounds = array<i64: 32, 32>}]} {
    %c0_i32 = arith.constant 0 : i32
    %0 = arith.cmpi eq, %arg2, %c0_i32 : i32
    %1 = arith.extui %0 : i1 to i32
    %c0_i32_0 = arith.constant 0 : i32
    %2 = arith.cmpi ne, %1, %c0_i32_0 : i32
    scf.if %2 {
      %cst_10 = arith.constant 0.000000e+00 : f32
      %12 = vector.broadcast %cst_10 : f32 to vector<32x32xf32>
      %c0_11 = arith.constant 0 : index
      %c0_12 = arith.constant 0 : index
      %13 = vector.load %arg8[%c0_11, %c0_12] : memref<32x32xf32, #tpu.memory_space<vmem>>, vector<32x32xf32>
      tpu.vector_store %arg8[%c0_11, %c0_12], %12 {strides = array<i32>} : memref<32x32xf32, #tpu.memory_space<vmem>>, vector<32x32xf32>,
    } else {
    }
    %c0 = arith.constant 0 : index
    %c0_1 = arith.constant 0 : index
    %3 = vector.load %arg8[%c0, %c0_1] : memref<32x32xf32, #tpu.memory_space<vmem>>, vector<32x32xf32>
    %c0_2 = arith.constant 0 : index
    %c0_3 = arith.constant 0 : index
    %4 = vector.load %arg3[%c0_2, %c0_3] : memref<32x64xbf16, #tpu.memory_space<vmem>>, vector<32x64xbf16>
    %c0_4 = arith.constant 0 : index
    %c0_5 = arith.constant 0 : index
    %5 = vector.load %arg4[%c0_4, %c0_5] : memref<64x32xbf16, #tpu.memory_space<vmem>>, vector<64x32xbf16>
    %cst = arith.constant dense<0.000000e+00> : vector<32x32xf32>
    %6 = tpu.matmul %4, %5, %cst {dimension_numbers = #tpu.dot_dimension_numbers<[1], [0], [0], [1], [0, 0, 1, 1], [], []>} : vector<32x64xbf16>, vector<64x32xbf16>, vector<32x32xf32> -> vector<32x32xf32>
    %7 = arith.addf %3, %6 : vector<32x32xf32>
    %c0_6 = arith.constant 0 : index
    %c0_7 = arith.constant 0 : index
    %8 = vector.load %arg8[%c0_6, %c0_7] : memref<32x32xf32, #tpu.memory_space<vmem>>, vector<32x32xf32>
    tpu.vector_store %arg8[%c0_6, %c0_7], %7 {strides = array<i32>} : memref<32x32xf32, #tpu.memory_space<vmem>>, vector<32x32xf32>,
    %c0_i32_8 = arith.constant 0 : i32
    %9 = arith.cmpi eq, %arg2, %c0_i32_8 : i32
    %10 = arith.extui %9 : i1 to i32
    %c0_i32_9 = arith.constant 0 : i32
    %11 = arith.cmpi ne, %10, %c0_i32_9 : i32
    scf.if %11 {
      %c0_10 = arith.constant 0 : index
      %c0_11 = arith.constant 0 : index
      %12 = vector.load %arg8[%c0_10, %c0_11] : memref<32x32xf32, #tpu.memory_space<vmem>>, vector<32x32xf32>
      %c0_12 = arith.constant 0 : index
      %c0_13 = arith.constant 0 : index
      %13 = vector.load %arg5[%c0_12, %c0_13] : memref<1x32xf32, #tpu.memory_space<vmem>>, vector<1x32xf32>
      %14 = vector.broadcast %13 : vector<1x32xf32> to vector<32x32xf32>
      %15 = arith.addf %12, %14 : vector<32x32xf32>
      %c0_14 = arith.constant 0 : index
      %c0_15 = arith.constant 0 : index
      %16 = vector.load %arg6[%c0_14, %c0_15] : memref<32x32xf32, #tpu.memory_space<vmem>>, vector<32x32xf32>
      %17 = arith.addf %15, %16 : vector<32x32xf32>
      %c0_16 = arith.constant 0 : index
      %c0_17 = arith.constant 0 : index
      %18 = vector.load %arg7[%c0_16, %c0_17] : memref<32x32xf32, #tpu.memory_space<vmem>>, vector<32x32xf32>
      tpu.vector_store %arg7[%c0_16, %c0_17], %17 {strides = array<i32>} : memref<32x32xf32, #tpu.memory_space<vmem>>, vector<32x32xf32>,
    } else {
    }
    return
  }
  func.func @transform_0(%arg0: i32, %arg1: i32, %arg2: i32) -> (i32, i32) {
    %c0_i32 = arith.constant 0 : i32
    return %arg0, %arg2 : i32, i32
  }
  func.func @transform_1(%arg0: i32, %arg1: i32, %arg2: i32) -> (i32, i32) {
    %c0_i32 = arith.constant 0 : i32
    return %arg2, %arg1 : i32, i32
  }
  func.func @transform_2(%arg0: i32, %arg1: i32, %arg2: i32) -> (i32, i32) {
    %c0_i32 = arith.constant 0 : i32
    %c0_i32_0 = arith.constant 0 : i32
    return %c0_i32, %arg1 : i32, i32
  }
  func.func @transform_3(%arg0: i32, %arg1: i32, %arg2: i32) -> (i32, i32) {
    %c0_i32 = arith.constant 0 : i32
    return %arg0, %arg1 : i32, i32
  }
  func.func @transform_4(%arg0: i32, %arg1: i32, %arg2: i32) -> (i32, i32) {
    %c0_i32 = arith.constant 0 : i32
    return %arg0, %arg1 : i32, i32
  }
}

</mosaic_0001>

<bundles_post_ra>
// kernel: mbart_decoder_forward.26
= control target key start
LH: loop header
LB: loop body
LE: loop exit
PB: predicated region body
PF: predicated region fallthrough
CT: control target
= control target key end

     0   :  { %vm18_vm0 = vcmask 261120   ;;  %v156_v8 = vmov 32.0   ;;  %vm134_vm10 = vcmask 257024   ;;  %s234_s0 = inlined_call_operand.vmem [shape: f32[32,32], index: 0, kind: input, shape index: {}]   ;;  %s235_s1 = inlined_call_operand.vmem [shape: f32[1,32], index: 1, kind: input, shape index: {}]   ;;  %s236_s2 = inlined_call_operand.vmem [shape: f32[1,32], index: 2, kind: input, shape index: {}]   ;;  %s237_s3 = inlined_call_operand.vmem [shape: bf16[32,32], index: 3, kind: output, shape index: {}]  }
   0x1   :  { %v16_v0 = vld [vmem:[%s234_s0 + $0x10] sm:$0xff]  ;;  %v14_v1 = vld [vmem:[%s234_s0] sm:$0xff]  ;;  %v17_v4 = vld [vmem:[%s234_s0 + $0x18] sm:$0xff]  ;;  %146 = vrcp.f32 %v156_v8 }
   0x2   :  { %v25_v2 = vsel %vm18_vm0, %v16_v0, 0.0  ;;  %v19_v3 = vsel %vm18_vm0, %v14_v1, 0.0  ;;  %v15_v5 = vld [vmem:[%s234_s0 + $0x8] sm:$0xff]  ;;  %v28_v6 = vsel %vm18_vm0, %v17_v4, 0.0  ;;  %v144_v61 = vld [vmem:[%s235_s1] ss:$0 sm:$0xff] }
   0x3   :  { %26 = vadd.xlane.f32.xlu1 %v25_v2  ;;  %20 = vadd.xlane.f32.xlu0 %v19_v3  ;;  %v22_v7 = vsel %vm18_vm0, %v15_v5, 0.0  ;;  %v145_v2 = vld [vmem:[%s236_s2] ss:$0 sm:$0xff] }
   0x7   :  { %v147_v9 = vpop.eup %146 }
   0x8   :  { %v32_v10 = vmul.f32 32.0, %v147_v9  ;;  %vm36_vm1 = vweird.f32 %v147_v9 }
   0xa   :  { %v33_v11 = vsub.f32 1.0, %v32_v10 }
   0xb   :  { %29 = vadd.xlane.f32.xlu1 %v28_v6  ;;  %23 = vadd.xlane.f32.xlu0 %v22_v7 }
   0xc   :  { %v34_v12 = vmul.f32 %v147_v9, %v33_v11 }
   0xe   :  { %v35_v13 = vadd.f32 %v147_v9, %v34_v12 }
  0x10   :  { %v37_v14 = vsel %vm36_vm1, %v147_v9, %v35_v13 }
  0x76   :  { %v27_v15 = vpop.xlane.xlu1 %26  ;;  %v21_v16 = vpop.xlane.xlu0 %20 }
  0x77   :  { %v40_v17 = vmul.f32 %v37_v14, %v27_v15  ;;  %v38_v18 = vmul.f32 %v37_v14, %v21_v16 }
  0x79   :  { %v193_v19 = vsub.f32 %v16_v0, %v40_v17  ;;  %v42_v20 = vsub.f32 %v14_v1, %v38_v18 }
  0x7b   :  { %v48_v21 = vmul.f32 %v193_v19, %v193_v19  ;;  %v46_v22 = vmul.f32 %v42_v20, %v42_v20 }
  0x7d   :  { %v56_v23 = vsel %vm18_vm0, %v48_v21, 0.0  ;;  %v50_v24 = vsel %vm18_vm0, %v46_v22, 0.0 }
  0x7e   :  { %v30_v25 = vpop.xlane.xlu1 %29  ;;  %57 = vadd.xlane.f32.xlu0 %v56_v23  ;;  %51 = vadd.xlane.f32.xlu2 %v50_v24  ;;  %v24_v26 = vpop.xlane.xlu0 %23 }
  0x7f   :  { %v41_v27 = vmul.f32 %v37_v14, %v30_v25  ;;  %v39_v28 = vmul.f32 %v37_v14, %v24_v26 }
  0x81   :  { %v199_v29 = vsub.f32 %v17_v4, %v41_v27  ;;  %v201_v30 = vsub.f32 %v15_v5, %v39_v28 }
  0x83   :  { %v49_v31 = vmul.f32 %v199_v29, %v199_v29  ;;  %v47_v32 = vmul.f32 %v201_v30, %v201_v30 }
  0x85   :  { %v59_v33 = vsel %vm18_vm0, %v49_v31, 0.0  ;;  %v53_v34 = vsel %vm18_vm0, %v47_v32, 0.0 }
  0x86   :  { %60 = vadd.xlane.f32.xlu1 %v59_v33  ;;  %54 = vadd.xlane.f32.xlu2 %v53_v34 }
  0xf1   :  { %v52_v35 = vpop.xlane.xlu2 %51  ;;  %v58_v36 = vpop.xlane.xlu0 %57 }
  0xf2   :  { %v62_v37 = vmul.f32 %v52_v35, %v37_v14  ;;  %v64_v38 = vmul.f32 %v58_v36, %v37_v14 }
  0xf4   :  { %v66_v39 = vadd.f32 1e-05, %v62_v37  ;;  %v68_v40 = vadd.f32 1e-05, %v64_v38 }
  0xf6   :  { %148 = vrsqrt.f32 %v66_v39  ;;  %vm76_vm4 = vweird.f32 %v66_v39  ;;  %vm96_vm6 = vweird.f32 %v68_v40 }
  0xf7   :  { %150 = vrsqrt.f32 %v68_v40 }
  0xf9   :  { %v61_v41 = vpop.xlane.xlu1 %60  ;;  %v55_v42 = vpop.xlane.xlu2 %54 }
  0xfa   :  { %v65_v43 = vmul.f32 %v61_v41, %v37_v14  ;;  %v63_v44 = vmul.f32 %v55_v42, %v37_v14 }
  0xfc   :  { %v149_v45 = vpop.eup %148  ;;  %v69_v46 = vadd.f32 1e-05, %v65_v43  ;;  %v67_v47 = vadd.f32 1e-05, %v63_v44 }
  0xfd   :  { %v151_v48 = vpop.eup %150  ;;  %v71_v49 = vmul.f32 %v149_v45, %v66_v39  ;;  %vm77_vm2 = vweird.f32 %v149_v45 }
  0xfe   :  { %v91_v50 = vmul.f32 %v151_v48, %v68_v40  ;;  %152 = vrsqrt.f32 %v69_v46  ;;  %vm97_vm3 = vweird.f32 %v151_v48  ;;  %vm78_vm5 = vmor %vm76_vm4, %vm77_vm2  ;;  %vm106_vm11 = vweird.f32 %v69_v46 }
  0xff   :  { %v72_v51 = vmul.f32 %v149_v45, %v71_v49  ;;  %154 = vrsqrt.f32 %v67_v47  ;;  %vm98_vm7 = vmor %vm96_vm6, %vm97_vm3  ;;  %vm86_vm13 = vweird.f32 %v67_v47 }
 0x100   :  { %v92_v52 = vmul.f32 %v151_v48, %v91_v50 }
 0x101   :  { %v73_v53 = vmul.f32 0.5, %v72_v51 }
 0x102   :  { %v93_v54 = vmul.f32 0.5, %v92_v52 }
 0x103   :  { %v74_v55 = vsub.f32 1.5, %v73_v53 }
 0x104   :  { %v153_v56 = vpop.eup %152  ;;  %v94_v57 = vsub.f32 1.5, %v93_v54 }
 0x105   :  { %v155_v58 = vpop.eup %154  ;;  %v75_v59 = vmul.f32 %v149_v45, %v74_v55  ;;  %v101_v60 = vmul.f32 %v153_v56, %v69_v46  ;;  %vm107_vm8 = vweird.f32 %v153_v56 }
 0x106   :  { %v95_v62 = vmul.f32 %v151_v48, %v94_v57  ;;  %v81_v63 = vmul.f32 %v155_v58, %v67_v47  ;;  %vm87_vm9 = vweird.f32 %v155_v58  ;;  %vm108_vm12 = vmor %vm106_vm11, %vm107_vm8 }
 0x107   :  { %v79_v0 = vsel %vm78_vm5, %v149_v45, %v75_v59  ;;  %v102_v1 = vmul.f32 %v153_v56, %v101_v60  ;;  %vm88_vm14 = vmor %vm86_vm13, %vm87_vm9 }
 0x108   :  { %v110_v3 = vmul.f32 %v79_v0, %v42_v20  ;;  %v99_v4 = vsel %vm98_vm7, %v151_v48, %v95_v62  ;;  %v82_v5 = vmul.f32 %v155_v58, %v81_v63 }
 0x109   :  { %v112_v6 = vmul.f32 %v99_v4, %v193_v19  ;;  %v103_v7 = vmul.f32 0.5, %v102_v1 }
 0x10a   :  { %v118_v8 = vmul.f32 %v144_v61, %v110_v3  ;;  %v83_v9 = vmul.f32 0.5, %v82_v5 }
 0x10b   :  { %v120_v10 = vmul.f32 %v144_v61, %v112_v6  ;;  %v104_v11 = vsub.f32 1.5, %v103_v7 }
 0x10c   :  { %v126_v12 = vadd.f32 %v145_v2, %v118_v8  ;;  %v84_v13 = vsub.f32 1.5, %v83_v9 }
 0x10d   :  { %v128_v14 = vadd.f32 %v145_v2, %v120_v10  ;;  %v105_v15 = vmul.f32 %v153_v56, %v104_v11 }
 0x10e   :  { %v130_v16 = vpack.c.bf16 %v126_v12, %v126_v12  ;;  %v85_v17 = vmul.f32 %v155_v58, %v84_v13 }
 0x10f   :  { %v132_v18 = vpack.c.bf16 %v128_v14, %v128_v14  ;;  %v109_v20 = vsel %vm108_vm12, %v153_v56, %v105_v15 }
 0x110   :  { %135 = vst.msk [vmem:[%s237_s3] sm:$0xf] %vm134_vm10, %v130_v16  ;;  %v113_v19 = vmul.f32 %v109_v20, %v199_v29  ;;  %v89_v21 = vsel %vm88_vm14, %v155_v58, %v85_v17 }
 0x111   :  { %137 = vst.msk [vmem:[%s237_s3 + $0x8] sm:$0xf] %vm134_vm10, %v132_v18  ;;  %v111_v22 = vmul.f32 %v89_v21, %v201_v30 }
 0x112   :  { %v121_v23 = vmul.f32 %v144_v61, %v113_v19 }
 0x113   :  { %v119_v24 = vmul.f32 %v144_v61, %v111_v22 }
 0x114   :  { %v129_v25 = vadd.f32 %v145_v2, %v121_v23 }
 0x115   :  { %v127_v26 = vadd.f32 %v145_v2, %v119_v24 }
 0x116   :  { %v133_v27 = vpack.c.bf16 %v129_v25, %v129_v25 }
 0x117   :  { %v131_v28 = vpack.c.bf16 %v127_v26, %v127_v26 }
 0x118   :  { %138 = vst.msk [vmem:[%s237_s3 + $0xc] sm:$0xf] %vm134_vm10, %v133_v27 }
 0x119   :  { %136 = vst.msk [vmem:[%s237_s3 + $0x4] sm:$0xf] %vm134_vm10, %v131_v28 }

// kernel: mbart_decoder_forward.27
= control target key start
LH: loop header
LB: loop body
LE: loop exit
PB: predicated region body
PF: predicated region fallthrough
CT: control target
= control target key end

     0   :  { %vm19_vm0 = vcmask 785408   ;;  %v147_v1 = vmov 0.0   ;;  %vm58_vm1 = vcmask 261120   ;;  %vm112_vm2 = vcmask 781312   ;;  %s203_s1 = inlined_call_operand.vmem [shape: bf16[32,96], index: 1, kind: input, shape index: {}]   ;;  %s204_s2 = inlined_call_operand.vmem [shape: f32[1,96], index: 2, kind: input, shape index: {}]   ;;  %s205_s0 = inlined_call_operand.vmem [shape: bf16[32,32], index: 0, kind: input, shape index: {}]   ;;  %s206_s3 = inlined_call_operand.vmem [shape: bf16[32,96], index: 3, kind: output, shape index: {}]  }
   0x1   :  { %v142_v0 = vld [vmem:[%s203_s1 + $0x8] sm:$0xff]  ;;  %20 = vst.msk [vmem:[#allocation2] sm:$0xff] %vm19_vm0, %v147_v1  ;;  %v141_v2 = vld [vmem:[%s203_s1] sm:$0xff] }
   0x2   :  { %21 = vst.msk [vmem:[#allocation2 + $0x8] sm:$0xff] %vm19_vm0, %v147_v1  ;;  %71 = vmatpush.bf16.msra.mxu0 %v142_v0  ;;  %143 = vmatpush.bf16.msra.mxu1 %v142_v0  ;;  %v139_v3 = vld [vmem:[%s205_s0] sm:$0xff]  ;;  %v140_v4 = vld [vmem:[%s205_s0 + $0x8] sm:$0xff] }
   0x3   :  { %22 = vst.msk [vmem:[#allocation2 + $0x10] sm:$0xff] %vm19_vm0, %v147_v1  ;;  %v146_v13 = vld [vmem:[%s204_s2] ss:$0 sm:$0xff] }
   0x4   :  { %23 = vst.msk [vmem:[#allocation2 + $0x18] sm:$0xff] %vm19_vm0, %v147_v1 }
   0x6   :  { %72 = vmatpush.bf16.msra.mxu0 %v141_v2  ;;  %144 = vmatpush.bf16.msra.mxu1 %v141_v2 }
   0x8   :  { %v24_v5 = vld [vmem:[#allocation2] sm:$0xff] }
   0x9   :  { %137 = vmatmul.msk.bf16.vlgmr.msra.gmra.mxu0 %vm58_vm1, %v139_v3  ;;  %138 = vmatmul.msk.bf16.vlgmr.msra.gmra.mxu1 %vm58_vm1, %v140_v4  ;;  %v25_v11 = vld [vmem:[#allocation2 + $0x8] sm:$0xff] }
   0xa   :  { %v26_v6 = vld [vmem:[#allocation2 + $0x10] sm:$0xff] }
   0xb   :  { %v27_v12 = vld [vmem:[#allocation2 + $0x18] sm:$0xff] }
  0x86   :  { %v74_v7 = vpop.f32.mrf.mxu0  ;;  %v79_v8 = vpop.f32.mrf.mxu1 }
  0x87   :  { %v84_v9 = vadd.f32 %v74_v7, %v24_v5  ;;  %v86_v10 = vadd.f32 %v79_v8, %v26_v6 }
  0x89   :  { %89 = vst.msk [vmem:[#allocation2] sm:$0xff] %vm19_vm0, %v84_v9 }
  0x8a   :  { %91 = vst.msk [vmem:[#allocation2 + $0x10] sm:$0xff] %vm19_vm0, %v86_v10 }
  0x8e   :  { %v76_v14 = vpop.f32.mrf.mxu0  ;;  %v81_v15 = vpop.f32.mrf.mxu1 }
  0x8f   :  { %v85_v16 = vadd.f32 %v76_v14, %v25_v11  ;;  %v87_v17 = vadd.f32 %v81_v15, %v27_v12 }
  0x90   :  { %v96_v18 = vld [vmem:[#allocation2] sm:$0xff] }
  0x91   :  { %v104_v19 = vadd.f32 %v146_v13, %v96_v18  ;;  %v98_v20 = vld [vmem:[#allocation2 + $0x10] sm:$0xff]  ;;  %90 = vst.msk [vmem:[#allocation2 + $0x8] sm:$0xff] %vm19_vm0, %v85_v16 }
  0x92   :  { %v106_v21 = vadd.f32 %v146_v13, %v98_v20  ;;  %92 = vst.msk [vmem:[#allocation2 + $0x18] sm:$0xff] %vm19_vm0, %v87_v17 }
  0x93   :  { %v108_v22 = vpack.c.bf16 %v104_v19, %v104_v19 }
  0x94   :  { %v110_v23 = vpack.c.bf16 %v106_v21, %v106_v21 }
  0x95   :  { %113 = vst.msk [vmem:[%s206_s3] sm:$0xf] %vm112_vm2, %v108_v22 }
  0x96   :  { %115 = vst.msk [vmem:[%s206_s3 + $0x8] sm:$0xf] %vm112_vm2, %v110_v23 }
  0x98   :  { %v97_v24 = vld [vmem:[#allocation2 + $0x8] sm:$0xff] }
  0x99   :  { %v105_v25 = vadd.f32 %v146_v13, %v97_v24  ;;  %v99_v26 = vld [vmem:[#allocation2 + $0x18] sm:$0xff] }
  0x9a   :  { %v107_v27 = vadd.f32 %v146_v13, %v99_v26 }
  0x9b   :  { %v109_v28 = vpack.c.bf16 %v105_v25, %v105_v25 }
  0x9c   :  { %v111_v29 = vpack.c.bf16 %v107_v27, %v107_v27 }
  0x9d   :  { %114 = vst.msk [vmem:[%s206_s3 + $0x4] sm:$0xf] %vm112_vm2, %v109_v28 }
  0x9e   :  { %116 = vst.msk [vmem:[%s206_s3 + $0xc] sm:$0xf] %vm112_vm2, %v111_v29 }

// kernel: mbart_decoder_forward.25
= control target key start
LH: loop header
LB: loop body
LE: loop exit
PB: predicated region body
PF: predicated region fallthrough
CT: control target
= control target key end

     0   :  { %vm29_vm0 = vcmask 261120   ;;  %v162_v16 = vmov 32.0   ;;  %s262_s0 = inlined_call_operand.vmem [shape: f32[32,32], index: 0, kind: input, shape index: {}]   ;;  %s263_s3 = inlined_call_operand.vmem [shape: f32[32,32], index: 3, kind: input, shape index: {}]   ;;  %s264_s1 = inlined_call_operand.vmem [shape: f32[1,32], index: 1, kind: input, shape index: {}]   ;;  %s265_s2 = inlined_call_operand.vmem [shape: f32[1,32], index: 2, kind: input, shape index: {}]   ;;  %s266_s4 = inlined_call_operand.vmem [shape: f32[32,32], index: 4, kind: output, shape index: {}]  }
   0x1   :  { %v19_v0 = vld [vmem:[%s262_s0 + $0x10] sm:$0xff]  ;;  %v17_v2 = vld [vmem:[%s262_s0] sm:$0xff]  ;;  %v20_v6 = vld [vmem:[%s262_s0 + $0x18] sm:$0xff]  ;;  %152 = vrcp.f32 %v162_v16 }
   0x2   :  { %v23_v1 = vld [vmem:[%s263_s3 + $0x10] sm:$0xff]  ;;  %v21_v4 = vld [vmem:[%s263_s3] sm:$0xff]  ;;  %v24_v7 = vld [vmem:[%s263_s3 + $0x18] sm:$0xff] }
   0x3   :  { %v27_v3 = vadd.f32 %v23_v1, %v19_v0  ;;  %v25_v5 = vadd.f32 %v21_v4, %v17_v2  ;;  %v18_v9 = vld [vmem:[%s262_s0 + $0x8] sm:$0xff]  ;;  %v28_v12 = vadd.f32 %v24_v7, %v20_v6 }
   0x4   :  { %v22_v10 = vld [vmem:[%s263_s3 + $0x8] sm:$0xff] }
   0x5   :  { %v36_v8 = vsel %vm29_vm0, %v27_v3, 0.0  ;;  %v30_v11 = vsel %vm29_vm0, %v25_v5, 0.0  ;;  %v26_v13 = vadd.f32 %v22_v10, %v18_v9  ;;  %v39_v14 = vsel %vm29_vm0, %v28_v12, 0.0  ;;  %v151_v10 = vld [vmem:[%s265_s2] ss:$0 sm:$0xff] }
   0x6   :  { %37 = vadd.xlane.f32.xlu1 %v36_v8  ;;  %31 = vadd.xlane.f32.xlu0 %v30_v11 }
   0x7   :  { %v33_v15 = vsel %vm29_vm0, %v26_v13, 0.0  ;;  %v153_v17 = vpop.eup %152 }
   0x8   :  { %v43_v18 = vmul.f32 32.0, %v153_v17  ;;  %vm47_vm1 = vweird.f32 %v153_v17 }
   0xa   :  { %v44_v19 = vsub.f32 1.0, %v43_v18 }
   0xc   :  { %v45_v20 = vmul.f32 %v153_v17, %v44_v19 }
   0xe   :  { %40 = vadd.xlane.f32.xlu1 %v39_v14  ;;  %34 = vadd.xlane.f32.xlu0 %v33_v15  ;;  %v46_v21 = vadd.f32 %v153_v17, %v45_v20 }
  0x10   :  { %v48_v22 = vsel %vm47_vm1, %v153_v17, %v46_v21 }
  0x79   :  { %v38_v23 = vpop.xlane.xlu1 %37  ;;  %v32_v25 = vpop.xlane.xlu0 %31 }
  0x7a   :  { %v51_v24 = vmul.f32 %v48_v22, %v38_v23  ;;  %v49_v26 = vmul.f32 %v48_v22, %v32_v25 }
  0x7c   :  { %v216_v27 = vsub.f32 %v27_v3, %v51_v24  ;;  %v218_v28 = vsub.f32 %v25_v5, %v49_v26  ;;  %v150_v5 = vld [vmem:[%s264_s1] ss:$0 sm:$0xff] }
  0x7e   :  { %v59_v29 = vmul.f32 %v216_v27, %v216_v27  ;;  %v57_v30 = vmul.f32 %v218_v28, %v218_v28 }
  0x80   :  { %v67_v31 = vsel %vm29_vm0, %v59_v29, 0.0  ;;  %v61_v33 = vsel %vm29_vm0, %v57_v30, 0.0 }
  0x81   :  { %v41_v32 = vpop.xlane.xlu1 %40  ;;  %68 = vadd.xlane.f32.xlu0 %v67_v31  ;;  %62 = vadd.xlane.f32.xlu2 %v61_v33  ;;  %v35_v35 = vpop.xlane.xlu0 %34 }
  0x82   :  { %v52_v34 = vmul.f32 %v48_v22, %v41_v32  ;;  %v50_v36 = vmul.f32 %v48_v22, %v35_v35 }
  0x84   :  { %v226_v37 = vsub.f32 %v28_v12, %v52_v34  ;;  %v228_v38 = vsub.f32 %v26_v13, %v50_v36 }
  0x86   :  { %v60_v39 = vmul.f32 %v226_v37, %v226_v37  ;;  %v58_v40 = vmul.f32 %v228_v38, %v228_v38 }
  0x88   :  { %v70_v41 = vsel %vm29_vm0, %v60_v39, 0.0  ;;  %v64_v42 = vsel %vm29_vm0, %v58_v40, 0.0 }
  0x89   :  { %71 = vadd.xlane.f32.xlu1 %v70_v41  ;;  %65 = vadd.xlane.f32.xlu2 %v64_v42 }
  0xf4   :  { %v69_v43 = vpop.xlane.xlu0 %68  ;;  %v63_v44 = vpop.xlane.xlu2 %62 }
  0xf5   :  { %v75_v45 = vmul.f32 %v69_v43, %v48_v22  ;;  %v73_v46 = vmul.f32 %v63_v44, %v48_v22 }
  0xf7   :  { %v79_v47 = vadd.f32 1e-05, %v75_v45  ;;  %v77_v48 = vadd.f32 1e-05, %v73_v46 }
  0xf9   :  { %154 = vrsqrt.f32 %v79_v47  ;;  %vm107_vm4 = vweird.f32 %v79_v47  ;;  %vm87_vm5 = vweird.f32 %v77_v48 }
  0xfa   :  { %156 = vrsqrt.f32 %v77_v48 }
  0xfc   :  { %v72_v49 = vpop.xlane.xlu1 %71  ;;  %v66_v51 = vpop.xlane.xlu2 %65 }
  0xfd   :  { %v76_v50 = vmul.f32 %v72_v49, %v48_v22  ;;  %v74_v52 = vmul.f32 %v66_v51, %v48_v22 }
  0xff   :  { %v155_v53 = vpop.eup %154  ;;  %v80_v54 = vadd.f32 1e-05, %v76_v50  ;;  %v78_v57 = vadd.f32 1e-05, %v74_v52 }
 0x100   :  { %v157_v55 = vpop.eup %156  ;;  %v102_v56 = vmul.f32 %v155_v53, %v79_v47  ;;  %vm108_vm2 = vweird.f32 %v155_v53 }
 0x101   :  { %v82_v58 = vmul.f32 %v157_v55, %v77_v48  ;;  %158 = vrsqrt.f32 %v80_v54  ;;  %vm88_vm3 = vweird.f32 %v157_v55  ;;  %vm109_vm6 = vmor %vm107_vm4, %vm108_vm2  ;;  %vm117_vm10 = vweird.f32 %v80_v54 }
 0x102   :  { %v103_v59 = vmul.f32 %v155_v53, %v102_v56  ;;  %160 = vrsqrt.f32 %v78_v57  ;;  %vm89_vm7 = vmor %vm87_vm5, %vm88_vm3  ;;  %vm97_vm12 = vweird.f32 %v78_v57 }
 0x103   :  { %v83_v60 = vmul.f32 %v157_v55, %v82_v58 }
 0x104   :  { %v104_v61 = vmul.f32 0.5, %v103_v59 }
 0x105   :  { %v84_v62 = vmul.f32 0.5, %v83_v60 }
 0x106   :  { %v105_v63 = vsub.f32 1.5, %v104_v61 }
 0x107   :  { %v159_v0 = vpop.eup %158  ;;  %v85_v1 = vsub.f32 1.5, %v84_v62 }
 0x108   :  { %v161_v2 = vpop.eup %160  ;;  %v106_v3 = vmul.f32 %v155_v53, %v105_v63  ;;  %v112_v4 = vmul.f32 %v159_v0, %v80_v54  ;;  %vm118_vm8 = vweird.f32 %v159_v0 }
 0x109   :  { %v86_v6 = vmul.f32 %v157_v55, %v85_v1  ;;  %v92_v7 = vmul.f32 %v161_v2, %v78_v57  ;;  %vm98_vm9 = vweird.f32 %v161_v2  ;;  %vm119_vm11 = vmor %vm117_vm10, %vm118_vm8 }
 0x10a   :  { %v110_v8 = vsel %vm109_vm6, %v155_v53, %v106_v3  ;;  %v113_v9 = vmul.f32 %v159_v0, %v112_v4  ;;  %vm99_vm13 = vmor %vm97_vm12, %vm98_vm9 }
 0x10b   :  { %v90_v11 = vsel %vm89_vm7, %v157_v55, %v86_v6  ;;  %v123_v12 = vmul.f32 %v110_v8, %v216_v27  ;;  %v93_v13 = vmul.f32 %v161_v2, %v92_v7 }
 0x10c   :  { %v121_v14 = vmul.f32 %v90_v11, %v218_v28  ;;  %v114_v15 = vmul.f32 0.5, %v113_v9 }
 0x10d   :  { %v131_v16 = vmul.f32 %v150_v5, %v123_v12  ;;  %v94_v17 = vmul.f32 0.5, %v93_v13 }
 0x10e   :  { %v129_v18 = vmul.f32 %v150_v5, %v121_v14  ;;  %v115_v19 = vsub.f32 1.5, %v114_v15 }
 0x10f   :  { %v139_v20 = vadd.f32 %v151_v10, %v131_v16  ;;  %v95_v21 = vsub.f32 1.5, %v94_v17 }
 0x110   :  { %v137_v22 = vadd.f32 %v151_v10, %v129_v18  ;;  %v116_v23 = vmul.f32 %v159_v0, %v115_v19 }
 0x111   :  { %143 = vst.msk [vmem:[%s266_s4 + $0x10] sm:$0xff] %vm29_vm0, %v139_v20  ;;  %v96_v24 = vmul.f32 %v161_v2, %v95_v21 }
 0x112   :  { %141 = vst.msk [vmem:[%s266_s4] sm:$0xff] %vm29_vm0, %v137_v22  ;;  %v120_v25 = vsel %vm119_vm11, %v159_v0, %v116_v23 }
 0x113   :  { %v124_v26 = vmul.f32 %v120_v25, %v226_v37  ;;  %v100_v27 = vsel %vm99_vm13, %v161_v2, %v96_v24 }
 0x114   :  { %v122_v28 = vmul.f32 %v100_v27, %v228_v38 }
 0x115   :  { %v132_v29 = vmul.f32 %v150_v5, %v124_v26 }
 0x116   :  { %v130_v30 = vmul.f32 %v150_v5, %v122_v28 }
 0x117   :  { %v140_v31 = vadd.f32 %v151_v10, %v132_v29 }
 0x118   :  { %v138_v32 = vadd.f32 %v151_v10, %v130_v30 }
 0x119   :  { %144 = vst.msk [vmem:[%s266_s4 + $0x18] sm:$0xff] %vm29_vm0, %v140_v31 }
 0x11a   :  { %142 = vst.msk [vmem:[%s266_s4 + $0x8] sm:$0xff] %vm29_vm0, %v138_v32 }

// kernel: mbart_decoder_forward.28
= control target key start
LH: loop header
LB: loop body
LE: loop exit
PB: predicated region body
PF: predicated region fallthrough
CT: control target
= control target key end

     0   :  { %s492_s6 = smov 0   ;;  %s494_s7 = smov 0   ;;  %s542_s0 = inlined_call_operand.vmem [shape: bf16[1,4,32,24], index: 0, kind: input, shape index: {}]   ;;  %s543_s1 = inlined_call_operand.vmem [shape: bf16[1,4,32,8], index: 1, kind: output, shape index: {}]  }
   0x1   :  { %s496_s8 = smov 0  }
   0x2 LB: > { %s20_s9 = sadd.s32 1, %s474_s7  ;;  %p387_p0 = scmp.ge.s32.totalorder %s478_s8, 1  ;;  %s478_s8 = sphi %s496_s8, %s11_s8   ;;  %s474_s7 = sphi %s494_s7, %s545_s7   ;;  %s470_s6 = sphi %s492_s6, %s544_s6  }
   0x3   : > { %p21_p1 = scmp.ge.s32.totalorder %s20_s9, 4  ;;  %p107_p2 = scmp.lt.s32.totalorder %s478_s8, 5 }
   0x5   : > { %s547_s9 = smov (%p21_p1, %s20_s9), 0  ;;  %p108_p3 = pnand %p387_p0, %p107_p2 }
   0x6   : > { %p137_p4 = scmp.lt.s32.totalorder (!%p108_p3), %s470_s6, 3  ;;  %s480_s14 = smov (!%p108_p3), 120  }
   0x7   : > { %111 = sbr.rel (%p108_p3) target bundleno = 704 (0x2c0), region = 24  ;;  %s481_s15 = smov (!%p108_p3), 112  }
   0xc   : > { %s549_s6 = smov (!%p137_p4, %s470_s6), 3  ;;  %vm172_vm0 = vcmask 64512   ;;  %vm204_vm1 = vcmask 261120   ;;  %vm286_vm2 = vcmask 60416  }
   0xd   : > { %s406_s10 = sshll.u32 %s549_s6, 4 }
   0xe   : > { %s143_s13 = scalar_lea.vmem %s542_s0, %s406_s10  ;;  %s152_s18 = scalar_lea.vmem %s543_s1, %s406_s10 }
   0xf   : > { %v409_v0 = vld [vmem:[%s143_s13 + $0x8] sm:$0xff]  ;;  %v408_v1 = vld [vmem:[%s143_s13] sm:$0xff] }
  0x10   : > { %170 = vrot.lane.b32.xlu0 %v409_v0, %s480_s14 }
  0x18   : > { %168 = vrot.lane.b32.xlu0 %v408_v1, %s480_s14 }
  0x82   : > { %v171_v2 = vpop.permute.xlu0 %170 }
  0x83   : > { %v183_v3 = vsel %vm172_vm0, %v171_v2, 0 }
  0x84   : > { %191 = vmatpush.bf16.xpose.msra.mxu0 %v183_v3  ;;  %410 = vmatpush.bf16.xpose.msra.mxu2 %v183_v3 }
  0x8a   : > { %v169_v4 = vpop.permute.xlu0 %168 }
  0x8b   : > { %v180_v5 = vsel %vm172_vm0, %v169_v4, 0 }
  0x8c   : > { %192 = vmatpush.bf16.xpose.msra.mxu0 %v180_v5  ;;  %411 = vmatpush.bf16.xpose.msra.mxu2 %v180_v5 }
  0x93   : > { %400 = vmatmul.msk.bf16.vlgmr.msra.gmra.mxu0 %vm172_vm0, %v408_v1  ;;  %401 = vmatmul.msk.bf16.vlgmr.msra.gmra.mxu2 %vm172_vm0, %v409_v0 }
 0x110   : > { %v194_v6 = vpop.f32.mrf.mxu0 }
 0x111   : > { %v205_v7 = vsel %vm204_vm1, %v194_v6, -inf }
 0x112   : > { %206 = vmax.xlane.f32.xlu2 %v205_v7 }
 0x116   : > { %v199_v8 = vpop.f32.mrf.mxu2 }
 0x117   : > { %v211_v9 = vsel %vm204_vm1, %v199_v8, -inf }
 0x118   : > { %212 = vmax.xlane.f32.xlu1 %v211_v9  ;;  %v196_v10 = vpop.f32.mrf.mxu0 }
 0x119   : > { %v208_v11 = vsel %vm204_vm1, %v196_v10, -inf }
 0x11a   : > { %209 = vmax.xlane.f32.xlu2 %v208_v11 }
 0x11e   : > { %v201_v12 = vpop.f32.mrf.mxu2 }
 0x11f   : > { %v214_v13 = vsel %vm204_vm1, %v201_v12, -inf }
 0x120   : > { %215 = vmax.xlane.f32.xlu1 %v214_v13 }
 0x132   : > { %253 = vrot.lane.b32.xlu2 %v409_v0, %s481_s15 }
 0x185   : > { %v207_v14 = vpop.xlane.xlu2 %206 }
 0x186   : > { %v217_v15 = vsub.f32 %v194_v6, %v207_v14 }
 0x188   : > { %v221_v16 = vmul.f32 1.442695, %v217_v15 }
 0x18a   : > { %440 = vpow2.f32 %v221_v16 }
 0x18b   : > { %v213_v17 = vpop.xlane.xlu1 %212 }
 0x18c   : > { %v219_v18 = vsub.f32 %v199_v8, %v213_v17 }
 0x18d   : > { %v210_v19 = vpop.xlane.xlu2 %209 }
 0x18e   : > { %v225_v20 = vmul.f32 1.442695, %v219_v18  ;;  %v218_v21 = vsub.f32 %v196_v10, %v210_v19 }
 0x190   : > { %v441_v22 = vpop.eup %440  ;;  %442 = vpow2.f32 %v225_v20  ;;  %v223_v23 = vmul.f32 1.442695, %v218_v21 }
 0x191   : > { %v229_v24 = vsel %vm204_vm1, %v441_v22, 0.0 }
 0x192   : > { %444 = vpow2.f32 %v223_v23  ;;  %230 = vadd.xlane.f32.xlu1 %v229_v24 }
 0x193   : > { %v216_v25 = vpop.xlane.xlu1 %215 }
 0x194   : > { %v220_v26 = vsub.f32 %v201_v12, %v216_v25 }
 0x195   : > { %v254_v34 = vpop.permute.xlu2 %253 }
 0x196   : > { %v443_v27 = vpop.eup %442  ;;  %v227_v28 = vmul.f32 1.442695, %v220_v26  ;;  %269 = vmatpush.bf16.msra.mxu1 %v254_v34  ;;  %412 = vmatpush.bf16.msra.mxu3 %v254_v34 }
 0x197   : > { %v235_v29 = vsel %vm204_vm1, %v443_v27, 0.0 }
 0x198   : > { %v445_v30 = vpop.eup %444  ;;  %446 = vpow2.f32 %v227_v28  ;;  %236 = vadd.xlane.f32.xlu0 %v235_v29 }
 0x199   : > { %v232_v31 = vsel %vm204_vm1, %v445_v30, 0.0 }
 0x19a   : > { %233 = vadd.xlane.f32.xlu1 %v232_v31 }
 0x19e   : > { %v447_v32 = vpop.eup %446 }
 0x19f   : > { %v238_v33 = vsel %vm204_vm1, %v447_v32, 0.0 }
 0x1a2   : > { %239 = vadd.xlane.f32.xlu1 %v238_v33 }
 0x1bb   : > { %251 = vrot.lane.b32.xlu1 %v408_v1, %s481_s15 }
 0x205   : > { %v231_v35 = vpop.xlane.xlu1 %230 }
 0x20b   : > { %v237_v38 = vpop.xlane.xlu0 %236 }
 0x20d   : > { %v234_v36 = vpop.xlane.xlu1 %233 }
 0x20e   : > { %448 = vrcp.f32 %v234_v36 }
 0x214   : > { %v449_v39 = vpop.eup %448 }
 0x215   : > { %v240_v37 = vpop.xlane.xlu1 %239  ;;  %v246_v43 = vmul.f32 %v449_v39, %v445_v30 }
 0x216   : > { %450 = vrcp.f32 %v240_v37 }
 0x217   : > { %452 = vrcp.f32 %v231_v35 }
 0x218   : > { %454 = vrcp.f32 %v237_v38 }
 0x21c   : > { %v451_v40 = vpop.eup %450 }
 0x21d   : > { %v453_v41 = vpop.eup %452  ;;  %v248_v44 = vmul.f32 %v451_v40, %v447_v32 }
 0x21e   : > { %v455_v42 = vpop.eup %454  ;;  %v245_v46 = vmul.f32 %v453_v41, %v441_v22 }
 0x21f   : > { %v247_v47 = vmul.f32 %v455_v42, %v443_v27 }
 0x220   : > { %v249_v48 = vpack.c.bf16 %v246_v43, %v245_v46 }
 0x221   : > { %v250_v49 = vpack.c.bf16 %v248_v44, %v247_v47 }
 0x22d   : > { %v252_v45 = vpop.permute.xlu1 %251 }
 0x22e   : > { %270 = vmatpush.bf16.msra.mxu1 %v252_v45  ;;  %413 = vmatpush.bf16.msra.mxu3 %v252_v45 }
 0x231   : > { %402 = vmatmul.msk.bf16.vlgmr.msra.gmra.mxu1 %vm204_vm1, %v249_v48  ;;  %403 = vmatmul.msk.bf16.vlgmr.msra.gmra.mxu3 %vm204_vm1, %v250_v49 }
 0x2ae   : > { %v272_v50 = vpop.f32.mrf.mxu1 }
 0x2af   : > { %v282_v51 = vpack.c.bf16 %v272_v50, %v272_v50 }
 0x2b1   : > { %287 = vst.msk [vmem:[%s152_s18] sm:$0xf] %vm286_vm2, %v282_v51 }
 0x2b4   : > { %v277_v52 = vpop.f32.mrf.mxu3 }
 0x2b5   : > { %v284_v53 = vpack.c.bf16 %v277_v52, %v277_v52 }
 0x2b6   : > { %v274_v54 = vpop.f32.mrf.mxu1 }
 0x2b7   : > { %289 = vst.msk [vmem:[%s152_s18 + $0x8] sm:$0xf] %vm286_vm2, %v284_v53  ;;  %v283_v55 = vpack.c.bf16 %v274_v54, %v274_v54 }
 0x2b9   : > { %288 = vst.msk [vmem:[%s152_s18 + $0x4] sm:$0xf] %vm286_vm2, %v283_v55 }
 0x2bc   : > { %v279_v56 = vpop.f32.mrf.mxu3 }
 0x2bd   : > { %v285_v57 = vpack.c.bf16 %v279_v56, %v279_v56 }
 0x2bf   : > { %290 = vst.msk [vmem:[%s152_s18 + $0xc] sm:$0xf] %vm286_vm2, %v285_v57 }
 0x2c0 PF: > { %s11_s8 = sadd.s32 1, %s478_s8   ;;  %s544_s6 = smov %s474_s7 }
 0x2c1   : > { %p8_p5 = scmp.ge.s32.totalorder %s11_s8, 6   ;;  %s545_s7 = smov %s547_s9 }
 0x2c3   :  { %10 = sbr.rel (!%p8_p5) target bundleno = 2 (0x2), region = 54 }

// kernel: mbart_decoder_forward.31
= control target key start
LH: loop header
LB: loop body
LE: loop exit
PB: predicated region body
PF: predicated region fallthrough
CT: control target
= control target key end

     0   :  { %vm19_vm0 = vcmask 261120   ;;  %v146_v1 = vmov 0.0   ;;  %vm111_vm1 = vcmask 257024   ;;  %s204_s1 = inlined_call_operand.vmem [shape: bf16[32,32], index: 1, kind: input, shape index: {}]   ;;  %s205_s2 = inlined_call_operand.vmem [shape: f32[1,32], index: 2, kind: input, shape index: {}]   ;;  %s206_s0 = inlined_call_operand.vmem [shape: bf16[32,32], index: 0, kind: input, shape index: {}]   ;;  %s207_s3 = inlined_call_operand.vmem [shape: bf16[32,32], index: 3, kind: output, shape index: {}]  }
   0x1   :  { %v141_v0 = vld [vmem:[%s204_s1 + $0x8] sm:$0xff]  ;;  %20 = vst.msk [vmem:[#allocation2] sm:$0xff] %vm19_vm0, %v146_v1  ;;  %v140_v2 = vld [vmem:[%s204_s1] sm:$0xff] }
   0x2   :  { %21 = vst.msk [vmem:[#allocation2 + $0x8] sm:$0xff] %vm19_vm0, %v146_v1  ;;  %71 = vmatpush.bf16.msra.mxu0 %v141_v0  ;;  %142 = vmatpush.bf16.msra.mxu1 %v141_v0  ;;  %v138_v3 = vld [vmem:[%s206_s0] sm:$0xff]  ;;  %v139_v4 = vld [vmem:[%s206_s0 + $0x8] sm:$0xff] }
   0x3   :  { %22 = vst.msk [vmem:[#allocation2 + $0x10] sm:$0xff] %vm19_vm0, %v146_v1  ;;  %v145_v13 = vld [vmem:[%s205_s2] ss:$0 sm:$0xff] }
   0x4   :  { %23 = vst.msk [vmem:[#allocation2 + $0x18] sm:$0xff] %vm19_vm0, %v146_v1 }
   0x6   :  { %72 = vmatpush.bf16.msra.mxu0 %v140_v2  ;;  %143 = vmatpush.bf16.msra.mxu1 %v140_v2 }
   0x8   :  { %v24_v5 = vld [vmem:[#allocation2] sm:$0xff] }
   0x9   :  { %136 = vmatmul.msk.bf16.vlgmr.msra.gmra.mxu0 %vm19_vm0, %v138_v3  ;;  %137 = vmatmul.msk.bf16.vlgmr.msra.gmra.mxu1 %vm19_vm0, %v139_v4  ;;  %v25_v11 = vld [vmem:[#allocation2 + $0x8] sm:$0xff] }
   0xa   :  { %v26_v6 = vld [vmem:[#allocation2 + $0x10] sm:$0xff] }
   0xb   :  { %v27_v12 = vld [vmem:[#allocation2 + $0x18] sm:$0xff] }
  0x86   :  { %v74_v7 = vpop.f32.mrf.mxu0  ;;  %v79_v8 = vpop.f32.mrf.mxu1 }
  0x87   :  { %v84_v9 = vadd.f32 %v74_v7, %v24_v5  ;;  %v86_v10 = vadd.f32 %v79_v8, %v26_v6 }
  0x89   :  { %88 = vst.msk [vmem:[#allocation2] sm:$0xff] %vm19_vm0, %v84_v9 }
  0x8a   :  { %90 = vst.msk [vmem:[#allocation2 + $0x10] sm:$0xff] %vm19_vm0, %v86_v10 }
  0x8e   :  { %v76_v14 = vpop.f32.mrf.mxu0  ;;  %v81_v15 = vpop.f32.mrf.mxu1 }
  0x8f   :  { %v85_v16 = vadd.f32 %v76_v14, %v25_v11  ;;  %v87_v17 = vadd.f32 %v81_v15, %v27_v12 }
  0x90   :  { %v95_v18 = vld [vmem:[#allocation2] sm:$0xff] }
  0x91   :  { %v103_v19 = vadd.f32 %v145_v13, %v95_v18  ;;  %v97_v20 = vld [vmem:[#allocation2 + $0x10] sm:$0xff]  ;;  %89 = vst.msk [vmem:[#allocation2 + $0x8] sm:$0xff] %vm19_vm0, %v85_v16 }
  0x92   :  { %v105_v21 = vadd.f32 %v145_v13, %v97_v20  ;;  %91 = vst.msk [vmem:[#allocation2 + $0x18] sm:$0xff] %vm19_vm0, %v87_v17 }
  0x93   :  { %v107_v22 = vpack.c.bf16 %v103_v19, %v103_v19 }
  0x94   :  { %v109_v23 = vpack.c.bf16 %v105_v21, %v105_v21 }
  0x95   :  { %112 = vst.msk [vmem:[%s207_s3] sm:$0xf] %vm111_vm1, %v107_v22 }
  0x96   :  { %114 = vst.msk [vmem:[%s207_s3 + $0x8] sm:$0xf] %vm111_vm1, %v109_v23 }
  0x98   :  { %v96_v24 = vld [vmem:[#allocation2 + $0x8] sm:$0xff] }
  0x99   :  { %v104_v25 = vadd.f32 %v145_v13, %v96_v24  ;;  %v98_v26 = vld [vmem:[#allocation2 + $0x18] sm:$0xff] }
  0x9a   :  { %v106_v27 = vadd.f32 %v145_v13, %v98_v26 }
  0x9b   :  { %v108_v28 = vpack.c.bf16 %v104_v25, %v104_v25 }
  0x9c   :  { %v110_v29 = vpack.c.bf16 %v106_v27, %v106_v27 }
  0x9d   :  { %113 = vst.msk [vmem:[%s207_s3 + $0x4] sm:$0xf] %vm111_vm1, %v108_v28 }
  0x9e   :  { %115 = vst.msk [vmem:[%s207_s3 + $0xc] sm:$0xf] %vm111_vm1, %v110_v29 }

// kernel: mbart_decoder_forward.29
= control target key start
LH: loop header
LB: loop body
LE: loop exit
PB: predicated region body
PF: predicated region fallthrough
CT: control target
= control target key end

     0   :  { %vm22_vm0 = vcmask 261120   ;;  %v152_v1 = vmov 0.0   ;;  %s231_s1 = inlined_call_operand.vmem [shape: bf16[32,32], index: 1, kind: input, shape index: {}]   ;;  %s232_s2 = inlined_call_operand.vmem [shape: f32[1,32], index: 2, kind: input, shape index: {}]   ;;  %s233_s0 = inlined_call_operand.vmem [shape: bf16[32,32], index: 0, kind: input, shape index: {}]   ;;  %s234_s3 = inlined_call_operand.vmem [shape: f32[32,32], index: 3, kind: input, shape index: {}]   ;;  %s235_s4 = inlined_call_operand.vmem [shape: f32[32,32], index: 4, kind: output, shape index: {}]  }
   0x1   :  { %v147_v0 = vld [vmem:[%s231_s1 + $0x8] sm:$0xff]  ;;  %23 = vst.msk [vmem:[#allocation2] sm:$0xff] %vm22_vm0, %v152_v1  ;;  %v146_v2 = vld [vmem:[%s231_s1] sm:$0xff]  ;;  %v112_v22 = vld [vmem:[%s234_s3 + $0x10] sm:$0xff] }
   0x2   :  { %24 = vst.msk [vmem:[#allocation2 + $0x8] sm:$0xff] %vm22_vm0, %v152_v1  ;;  %74 = vmatpush.bf16.msra.mxu0 %v147_v0  ;;  %148 = vmatpush.bf16.msra.mxu1 %v147_v0  ;;  %v144_v3 = vld [vmem:[%s233_s0] sm:$0xff]  ;;  %v145_v4 = vld [vmem:[%s233_s0 + $0x8] sm:$0xff]  ;;  %v113_v30 = vld [vmem:[%s234_s3 + $0x18] sm:$0xff] }
   0x3   :  { %25 = vst.msk [vmem:[#allocation2 + $0x10] sm:$0xff] %vm22_vm0, %v152_v1  ;;  %v151_v13 = vld [vmem:[%s232_s2] ss:$0 sm:$0xff]  ;;  %v111_v27 = vld [vmem:[%s234_s3 + $0x8] sm:$0xff] }
   0x4   :  { %26 = vst.msk [vmem:[#allocation2 + $0x18] sm:$0xff] %vm22_vm0, %v152_v1  ;;  %v110_v19 = vld [vmem:[%s234_s3] sm:$0xff] }
   0x6   :  { %75 = vmatpush.bf16.msra.mxu0 %v146_v2  ;;  %149 = vmatpush.bf16.msra.mxu1 %v146_v2 }
   0x8   :  { %v27_v5 = vld [vmem:[#allocation2] sm:$0xff] }
   0x9   :  { %142 = vmatmul.msk.bf16.vlgmr.msra.gmra.mxu0 %vm22_vm0, %v144_v3  ;;  %143 = vmatmul.msk.bf16.vlgmr.msra.gmra.mxu1 %vm22_vm0, %v145_v4  ;;  %v28_v11 = vld [vmem:[#allocation2 + $0x8] sm:$0xff] }
   0xa   :  { %v29_v6 = vld [vmem:[#allocation2 + $0x10] sm:$0xff] }
   0xb   :  { %v30_v12 = vld [vmem:[#allocation2 + $0x18] sm:$0xff] }
  0x86   :  { %v77_v7 = vpop.f32.mrf.mxu0  ;;  %v82_v8 = vpop.f32.mrf.mxu1 }
  0x87   :  { %v87_v9 = vadd.f32 %v77_v7, %v27_v5  ;;  %v89_v10 = vadd.f32 %v82_v8, %v29_v6 }
  0x89   :  { %91 = vst.msk [vmem:[#allocation2] sm:$0xff] %vm22_vm0, %v87_v9 }
  0x8a   :  { %93 = vst.msk [vmem:[#allocation2 + $0x10] sm:$0xff] %vm22_vm0, %v89_v10 }
  0x8e   :  { %v79_v14 = vpop.f32.mrf.mxu0  ;;  %v84_v15 = vpop.f32.mrf.mxu1 }
  0x8f   :  { %v88_v16 = vadd.f32 %v79_v14, %v28_v11  ;;  %v90_v17 = vadd.f32 %v84_v15, %v30_v12 }
  0x90   :  { %v98_v18 = vld [vmem:[#allocation2] sm:$0xff] }
  0x91   :  { %v106_v20 = vadd.f32 %v151_v13, %v98_v18  ;;  %v100_v21 = vld [vmem:[#allocation2 + $0x10] sm:$0xff]  ;;  %92 = vst.msk [vmem:[#allocation2 + $0x8] sm:$0xff] %vm22_vm0, %v88_v16 }
  0x92   :  { %v108_v23 = vadd.f32 %v151_v13, %v100_v21  ;;  %94 = vst.msk [vmem:[#allocation2 + $0x18] sm:$0xff] %vm22_vm0, %v90_v17 }
  0x93   :  { %v114_v24 = vadd.f32 %v110_v19, %v106_v20 }
  0x94   :  { %v116_v25 = vadd.f32 %v112_v22, %v108_v23 }
  0x95   :  { %118 = vst.msk [vmem:[%s235_s4] sm:$0xff] %vm22_vm0, %v114_v24 }
  0x96   :  { %120 = vst.msk [vmem:[%s235_s4 + $0x10] sm:$0xff] %vm22_vm0, %v116_v25 }
  0x98   :  { %v99_v26 = vld [vmem:[#allocation2 + $0x8] sm:$0xff] }
  0x99   :  { %v107_v28 = vadd.f32 %v151_v13, %v99_v26  ;;  %v101_v29 = vld [vmem:[#allocation2 + $0x18] sm:$0xff] }
  0x9a   :  { %v109_v31 = vadd.f32 %v151_v13, %v101_v29 }
  0x9b   :  { %v115_v32 = vadd.f32 %v111_v27, %v107_v28 }
  0x9c   :  { %v117_v33 = vadd.f32 %v113_v30, %v109_v31 }
  0x9d   :  { %119 = vst.msk [vmem:[%s235_s4 + $0x8] sm:$0xff] %vm22_vm0, %v115_v32 }
  0x9e   :  { %121 = vst.msk [vmem:[%s235_s4 + $0x18] sm:$0xff] %vm22_vm0, %v117_v33 }

// kernel: mbart_decoder_forward.32
= control target key start
LH: loop header
LB: loop body
LE: loop exit
PB: predicated region body
PF: predicated region fallthrough
CT: control target
= control target key end

     0   :  { %vm19_vm0 = vcmask 523264   ;;  %v147_v1 = vmov 0.0   ;;  %vm58_vm1 = vcmask 261120   ;;  %vm112_vm2 = vcmask 519168   ;;  %s203_s1 = inlined_call_operand.vmem [shape: bf16[32,64], index: 1, kind: input, shape index: {}]   ;;  %s204_s2 = inlined_call_operand.vmem [shape: f32[1,64], index: 2, kind: input, shape index: {}]   ;;  %s205_s0 = inlined_call_operand.vmem [shape: bf16[32,32], index: 0, kind: input, shape index: {}]   ;;  %s206_s3 = inlined_call_operand.vmem [shape: bf16[32,64], index: 3, kind: output, shape index: {}]  }
   0x1   :  { %v142_v0 = vld [vmem:[%s203_s1 + $0x8] sm:$0xff]  ;;  %20 = vst.msk [vmem:[#allocation2] sm:$0xff] %vm19_vm0, %v147_v1  ;;  %v141_v2 = vld [vmem:[%s203_s1] sm:$0xff] }
   0x2   :  { %21 = vst.msk [vmem:[#allocation2 + $0x8] sm:$0xff] %vm19_vm0, %v147_v1  ;;  %71 = vmatpush.bf16.msra.mxu0 %v142_v0  ;;  %143 = vmatpush.bf16.msra.mxu1 %v142_v0  ;;  %v139_v3 = vld [vmem:[%s205_s0] sm:$0xff]  ;;  %v140_v4 = vld [vmem:[%s205_s0 + $0x8] sm:$0xff] }
   0x3   :  { %22 = vst.msk [vmem:[#allocation2 + $0x10] sm:$0xff] %vm19_vm0, %v147_v1  ;;  %v146_v13 = vld [vmem:[%s204_s2] ss:$0 sm:$0xff] }
   0x4   :  { %23 = vst.msk [vmem:[#allocation2 + $0x18] sm:$0xff] %vm19_vm0, %v147_v1 }
   0x6   :  { %72 = vmatpush.bf16.msra.mxu0 %v141_v2  ;;  %144 = vmatpush.bf16.msra.mxu1 %v141_v2 }
   0x8   :  { %v24_v5 = vld [vmem:[#allocation2] sm:$0xff] }
   0x9   :  { %137 = vmatmul.msk.bf16.vlgmr.msra.gmra.mxu0 %vm58_vm1, %v139_v3  ;;  %138 = vmatmul.msk.bf16.vlgmr.msra.gmra.mxu1 %vm58_vm1, %v140_v4  ;;  %v25_v11 = vld [vmem:[#allocation2 + $0x8] sm:$0xff] }
   0xa   :  { %v26_v6 = vld [vmem:[#allocation2 + $0x10] sm:$0xff] }
   0xb   :  { %v27_v12 = vld [vmem:[#allocation2 + $0x18] sm:$0xff] }
  0x86   :  { %v74_v7 = vpop.f32.mrf.mxu0  ;;  %v79_v8 = vpop.f32.mrf.mxu1 }
  0x87   :  { %v84_v9 = vadd.f32 %v74_v7, %v24_v5  ;;  %v86_v10 = vadd.f32 %v79_v8, %v26_v6 }
  0x89   :  { %89 = vst.msk [vmem:[#allocation2] sm:$0xff] %vm19_vm0, %v84_v9 }
  0x8a   :  { %91 = vst.msk [vmem:[#allocation2 + $0x10] sm:$0xff] %vm19_vm0, %v86_v10 }
  0x8e   :  { %v76_v14 = vpop.f32.mrf.mxu0  ;;  %v81_v15 = vpop.f32.mrf.mxu1 }
  0x8f   :  { %v85_v16 = vadd.f32 %v76_v14, %v25_v11  ;;  %v87_v17 = vadd.f32 %v81_v15, %v27_v12 }
  0x90   :  { %v96_v18 = vld [vmem:[#allocation2] sm:$0xff] }
  0x91   :  { %v104_v19 = vadd.f32 %v146_v13, %v96_v18  ;;  %v98_v20 = vld [vmem:[#allocation2 + $0x10] sm:$0xff]  ;;  %90 = vst.msk [vmem:[#allocation2 + $0x8] sm:$0xff] %vm19_vm0, %v85_v16 }
  0x92   :  { %v106_v21 = vadd.f32 %v146_v13, %v98_v20  ;;  %92 = vst.msk [vmem:[#allocation2 + $0x18] sm:$0xff] %vm19_vm0, %v87_v17 }
  0x93   :  { %v108_v22 = vpack.c.bf16 %v104_v19, %v104_v19 }
  0x94   :  { %v110_v23 = vpack.c.bf16 %v106_v21, %v106_v21 }
  0x95   :  { %113 = vst.msk [vmem:[%s206_s3] sm:$0xf] %vm112_vm2, %v108_v22 }
  0x96   :  { %115 = vst.msk [vmem:[%s206_s3 + $0x8] sm:$0xf] %vm112_vm2, %v110_v23 }
  0x98   :  { %v97_v24 = vld [vmem:[#allocation2 + $0x8] sm:$0xff] }
  0x99   :  { %v105_v25 = vadd.f32 %v146_v13, %v97_v24  ;;  %v99_v26 = vld [vmem:[#allocation2 + $0x18] sm:$0xff] }
  0x9a   :  { %v107_v27 = vadd.f32 %v146_v13, %v99_v26 }
  0x9b   :  { %v109_v28 = vpack.c.bf16 %v105_v25, %v105_v25 }
  0x9c   :  { %v111_v29 = vpack.c.bf16 %v107_v27, %v107_v27 }
  0x9d   :  { %114 = vst.msk [vmem:[%s206_s3 + $0x4] sm:$0xf] %vm112_vm2, %v109_v28 }
  0x9e   :  { %116 = vst.msk [vmem:[%s206_s3 + $0xc] sm:$0xf] %vm112_vm2, %v111_v29 }

// kernel: mbart_decoder_forward.36
= control target key start
LH: loop header
LB: loop body
LE: loop exit
PB: predicated region body
PF: predicated region fallthrough
CT: control target
= control target key end

     0   :  { %vm19_vm0 = vcmask 523264   ;;  %v151_v1 = vmov 0.0   ;;  %vm58_vm1 = vcmask 261120   ;;  %vm116_vm2 = vcmask 519168   ;;  %s207_s1 = inlined_call_operand.vmem [shape: bf16[32,64], index: 1, kind: input, shape index: {}]   ;;  %s208_s2 = inlined_call_operand.vmem [shape: f32[1,64], index: 2, kind: input, shape index: {}]   ;;  %s209_s0 = inlined_call_operand.vmem [shape: bf16[32,32], index: 0, kind: input, shape index: {}]   ;;  %s210_s3 = inlined_call_operand.vmem [shape: bf16[32,64], index: 3, kind: output, shape index: {}]  }
   0x1   :  { %v146_v0 = vld [vmem:[%s207_s1 + $0x8] sm:$0xff]  ;;  %20 = vst.msk [vmem:[#allocation2] sm:$0xff] %vm19_vm0, %v151_v1  ;;  %v145_v2 = vld [vmem:[%s207_s1] sm:$0xff] }
   0x2   :  { %21 = vst.msk [vmem:[#allocation2 + $0x8] sm:$0xff] %vm19_vm0, %v151_v1  ;;  %71 = vmatpush.bf16.msra.mxu0 %v146_v0  ;;  %147 = vmatpush.bf16.msra.mxu1 %v146_v0  ;;  %v143_v3 = vld [vmem:[%s209_s0] sm:$0xff]  ;;  %v144_v4 = vld [vmem:[%s209_s0 + $0x8] sm:$0xff] }
   0x3   :  { %22 = vst.msk [vmem:[#allocation2 + $0x10] sm:$0xff] %vm19_vm0, %v151_v1  ;;  %v150_v13 = vld [vmem:[%s208_s2] ss:$0 sm:$0xff] }
   0x4   :  { %23 = vst.msk [vmem:[#allocation2 + $0x18] sm:$0xff] %vm19_vm0, %v151_v1 }
   0x6   :  { %72 = vmatpush.bf16.msra.mxu0 %v145_v2  ;;  %148 = vmatpush.bf16.msra.mxu1 %v145_v2 }
   0x8   :  { %v24_v5 = vld [vmem:[#allocation2] sm:$0xff] }
   0x9   :  { %141 = vmatmul.msk.bf16.vlgmr.msra.gmra.mxu0 %vm58_vm1, %v143_v3  ;;  %142 = vmatmul.msk.bf16.vlgmr.msra.gmra.mxu1 %vm58_vm1, %v144_v4  ;;  %v25_v11 = vld [vmem:[#allocation2 + $0x8] sm:$0xff] }
   0xa   :  { %v26_v6 = vld [vmem:[#allocation2 + $0x10] sm:$0xff] }
   0xb   :  { %v27_v12 = vld [vmem:[#allocation2 + $0x18] sm:$0xff] }
  0x86   :  { %v74_v7 = vpop.f32.mrf.mxu0  ;;  %v79_v8 = vpop.f32.mrf.mxu1 }
  0x87   :  { %v84_v9 = vadd.f32 %v74_v7, %v24_v5  ;;  %v86_v10 = vadd.f32 %v79_v8, %v26_v6 }
  0x89   :  { %89 = vst.msk [vmem:[#allocation2] sm:$0xff] %vm19_vm0, %v84_v9 }
  0x8a   :  { %91 = vst.msk [vmem:[#allocation2 + $0x10] sm:$0xff] %vm19_vm0, %v86_v10 }
  0x8e   :  { %v76_v14 = vpop.f32.mrf.mxu0  ;;  %v81_v15 = vpop.f32.mrf.mxu1 }
  0x8f   :  { %v85_v16 = vadd.f32 %v76_v14, %v25_v11  ;;  %v87_v17 = vadd.f32 %v81_v15, %v27_v12 }
  0x90   :  { %v96_v18 = vld [vmem:[#allocation2] sm:$0xff] }
  0x91   :  { %v104_v19 = vadd.f32 %v150_v13, %v96_v18  ;;  %v98_v20 = vld [vmem:[#allocation2 + $0x10] sm:$0xff]  ;;  %90 = vst.msk [vmem:[#allocation2 + $0x8] sm:$0xff] %vm19_vm0, %v85_v16 }
  0x92   :  { %v106_v21 = vadd.f32 %v150_v13, %v98_v20  ;;  %92 = vst.msk [vmem:[#allocation2 + $0x18] sm:$0xff] %vm19_vm0, %v87_v17 }
  0x93   :  { %v108_v22 = vmax.f32 %v104_v19, 0.0 }
  0x94   :  { %v110_v23 = vmax.f32 %v106_v21, 0.0 }
  0x95   :  { %v112_v24 = vpack.c.bf16 %v108_v22, %v108_v22 }
  0x96   :  { %v114_v25 = vpack.c.bf16 %v110_v23, %v110_v23 }
  0x97   :  { %117 = vst.msk [vmem:[%s210_s3] sm:$0xf] %vm116_vm2, %v112_v24 }
  0x98   :  { %119 = vst.msk [vmem:[%s210_s3 + $0x8] sm:$0xf] %vm116_vm2, %v114_v25  ;;  %v97_v26 = vld [vmem:[#allocation2 + $0x8] sm:$0xff] }
  0x99   :  { %v105_v27 = vadd.f32 %v150_v13, %v97_v26  ;;  %v99_v28 = vld [vmem:[#allocation2 + $0x18] sm:$0xff] }
  0x9a   :  { %v107_v29 = vadd.f32 %v150_v13, %v99_v28 }
  0x9b   :  { %v109_v30 = vmax.f32 %v105_v27, 0.0 }
  0x9c   :  { %v111_v31 = vmax.f32 %v107_v29, 0.0 }
  0x9d   :  { %v113_v32 = vpack.c.bf16 %v109_v30, %v109_v30 }
  0x9e   :  { %v115_v33 = vpack.c.bf16 %v111_v31, %v111_v31 }
  0x9f   :  { %118 = vst.msk [vmem:[%s210_s3 + $0x4] sm:$0xf] %vm116_vm2, %v113_v32 }
  0xa0   :  { %120 = vst.msk [vmem:[%s210_s3 + $0xc] sm:$0xf] %vm116_vm2, %v115_v33 }

// kernel: mbart_decoder_forward.33
= control target key start
LH: loop header
LB: loop body
LE: loop exit
PB: predicated region body
PF: predicated region fallthrough
CT: control target
= control target key end

     0   :  { %10 = vsyncpa [#allocation3], 0  ;;  %s980_s0 = inlined_call_operand.vmem [shape: bf16[1,4,32,8], index: 0, kind: input, shape index: {}]   ;;  %s981_s1 = inlined_call_operand.vmem [shape: bf16[1,4,32,16], index: 1, kind: input, shape index: {}]   ;;  %s982_s2 = inlined_call_operand.vmem [shape: f32[1,32,32], index: 2, kind: input, shape index: {}]   ;;  %s983_s3 = inlined_call_operand.vmem [shape: bf16[1,4,32,8], index: 3, kind: output, shape index: {0}]   ;;  %s984_s4 = inlined_call_operand.hbm [shape: f32[1,4,32,32], index: 4, kind: output, shape index: {1}]  }
   0x1   :  { %12 = vsyncpa [#allocation3 + $0x1], 0  ;;  %s842_s15 = smov 0   ;;  %s844_s16 = smov 0  }
   0x2   :  { %s846_s17 = smov 0   ;;  %s848_s18 = smov 0  }
   0x3   :  { %s850_s19 = smov 0   ;;  %s852_s20 = smov 0  }
   0x4 LB: > { %s611_s21 = sadd.s32 4294967295, %s812_s20   ;;  %s612_s22 = sadd.s32 4294967294, %s812_s20   ;;  %s812_s20 = sphi %s852_s20, %s18_s20   ;;  %s808_s19 = sphi %s850_s19, %s991_s19   ;;  %s804_s18 = sphi %s848_s18, %s990_s18   ;;  %s800_s17 = sphi %s846_s17, %s989_s17   ;;  %s796_s16 = sphi %s844_s16, %s988_s16   ;;  %s792_s15 = sphi %s842_s15, %s987_s15  }
   0x5   : > { %s27_s23 = sadd.s32 1, %s808_s19  ;;  %s144_s24 = sadd.s32 1, %s800_s17 }
   0x6   : > { %p28_p0 = scmp.ge.s32.totalorder %s27_s23, 4  ;;  %p154_p1 = scmp.ne.s32.totalorder %s800_s17, %s796_s16 }
   0x7   : > { %p155_p2 = scmp.eq.s32.totalorder %s611_s21, 3  ;;  %p160_p3 = scmp.ne.s32.totalorder %s796_s16, %s792_s15 }
   0x8   : > { %s993_s23 = smov (%p28_p0, %s27_s23), 0  ;;  %p161_p5 = scmp.eq.s32.totalorder %s612_s22, 3 }
   0x9   : > { %p882_p4 = por %p155_p2, %p154_p1  ;;  %s140_s26 = ssub.s32 %s808_s19, %s993_s23 }
   0xa   : > { %p615_p6 = scmp.ge.s32.totalorder %s812_s20, 1  ;;  %p142_p7 = scmp.eq.s32.totalorder %s140_s26, 0 }
   0xb   : > { %p889_p8 = por %p161_p5, %p160_p3  ;;  %p206_p9 = scmp.lt.s32.totalorder %s812_s20, 5 }
   0xc   : > { %s895_s28 = scalar_select %p142_p7, %s800_s17, %s144_s24  }
   0xd   : > { %p207_p10 = pnand %p615_p6, %p206_p9 }
   0xe   : > { %p256_p11 = scmp.lt.s32.totalorder (!%p207_p10), %s804_s18, 3  ;;  %s251_s5 = sand.u32 (!%p207_p10), 1, %s796_s16  }
   0xf   : > { %210 = sbr.rel (%p207_p10) target bundleno = 585 (0x249), region = 32  ;;  %s616_s6 = sshll.u32 (!%p207_p10), %s251_s5, 5 }
  0x10   : > { %s655_s8 = sshll.u32 (!%p207_p10), %s804_s18, 5  ;;  %s447_s14 = scalar_lea.sflag (!%p207_p10), [#allocation3], %s251_s5 }
  0x11   : > { %s463_s11 = scalar_lea.hbm (!%p207_p10), %s984_s4, %s655_s8 }
  0x12   : > { %s466_s13 = sshll.u32 (!%p207_p10), %s463_s11, 4  ;;  %s467_s13 = int_to_ptr.hbm [resolvable:$true] %s466_s13 }
  0x13   : > { %s748_s21 = sshra.s32 (!%p207_p10), %s467_s13, 4  ;;  %s749_s21 = int_to_ptr.hbm [resolvable:$true] %s748_s21 }
  0x14   : > { %s257_s29 = scalar_select %p256_p11, %s804_s18, 3  ;;  %vm314_vm0 = vcmask 64512   ;;  %v290_v6 = vld [vmem:[%s982_s2] sm:$0xff]  ;;  %vm346_vm1 = vcmask 261120   ;;  %v292_v10 = vld [vmem:[%s982_s2 + $0x10] sm:$0xff]  ;;  %v291_v12 = vld [vmem:[%s982_s2 + $0x8] sm:$0xff] }
  0x15   : > { %v293_v18 = vld [vmem:[%s982_s2 + $0x18] sm:$0xff]  ;;  %s750_s22 = scalar_lea.hbm %s749_s21, 32  ;;  %s754_s18 = scalar_lea.hbm %s984_s4, 128 }
  0x16   : > { %s899_s30 = sshll.u32 %s257_s29, 4  ;;  %s814_s29 = smov 120  }
  0x17   : > { %s271_s7 = scalar_lea.vmem %s981_s1, %s899_s30  ;;  %s262_s10 = scalar_lea.vmem %s980_s0, %s899_s30 }
  0x18   : > { %v654_v0 = vld [vmem:[%s271_s7 + $0x8] sm:$0xff]  ;;  %v653_v2 = vld [vmem:[%s271_s7] sm:$0xff]  ;;  %s253_s7 = scalar_lea.vmem [#allocation2], %s616_s6  ;;  %p751_p12 = scmp.ne.s32.totalorder %s749_s21, %s750_s22 }
  0x19   : > { %v325_v1 = vsel %vm314_vm0, %v654_v0, 0  ;;  %v322_v3 = vsel %vm314_vm0, %v653_v2, 0  ;;  %v651_v4 = vld [vmem:[%s262_s10] sm:$0xff]  ;;  %v652_v5 = vld [vmem:[%s262_s10 + $0x8] sm:$0xff]  ;;  %s464_s12 = sshll.u32 %s253_s7, 4  ;;  %p755_p1 = scmp.lt.s32.totalorder %s749_s21, %s984_s4  ;;  %s465_s12 = int_to_ptr.vmem [resolvable:$true] %s464_s12 }
  0x1a   : > { %333 = vmatpush.bf16.xpose.msra.mxu0 %v325_v1  ;;  %656 = vmatpush.bf16.xpose.msra.mxu2 %v325_v1  ;;  %p752_p13 = pnand %p751_p12, %p882_p4  ;;  %p756_p2 = scmp.lt.s32.totalorder %s754_s18, %s750_s22 }
  0x1c   : > { %p753_p0 = pneg %p752_p13  ;;  %p757_p3 = por %p756_p2, %p755_p1 }
  0x1e   : > { %p758_p5 = pnand %p757_p3, %p753_p0 }
  0x22   : > { %334 = vmatpush.bf16.xpose.msra.mxu0 %v322_v3  ;;  %657 = vmatpush.bf16.xpose.msra.mxu2 %v322_v3 }
  0x29   : > { %639 = vmatmul.msk.bf16.vlgmr.msra.gmra.mxu0 %vm314_vm0, %v651_v4  ;;  %640 = vmatmul.msk.bf16.vlgmr.msra.gmra.mxu2 %vm314_vm0, %v652_v5 }
  0xa6   : > { %v336_v7 = vpop.f32.mrf.mxu0 }
  0xa7   : > { %v337_v8 = vadd.f32 %v336_v7, %v290_v6 }
  0xa9   : > { %v347_v9 = vsel %vm346_vm1, %v337_v8, -inf }
  0xaa   : > { %348 = vmax.xlane.f32.xlu1 %v347_v9 }
  0xac   : > { %v341_v11 = vpop.f32.mrf.mxu2 }
  0xad   : > { %v342_v13 = vadd.f32 %v341_v11, %v292_v10 }
  0xae   : > { %v338_v14 = vpop.f32.mrf.mxu0 }
  0xaf   : > { %v339_v15 = vadd.f32 %v338_v14, %v291_v12  ;;  %v353_v16 = vsel %vm346_vm1, %v342_v13, -inf }
  0xb0   : > { %354 = vmax.xlane.f32.xlu0 %v353_v16 }
  0xb1   : > { %v350_v17 = vsel %vm346_vm1, %v339_v15, -inf }
  0xb2   : > { %351 = vmax.xlane.f32.xlu1 %v350_v17 }
  0xb4   : > { %v343_v19 = vpop.f32.mrf.mxu2 }
  0xb5   : > { %v344_v20 = vadd.f32 %v343_v19, %v293_v18 }
  0xb7   : > { %v356_v21 = vsel %vm346_vm1, %v344_v20, -inf }
  0xb8   : > { %357 = vmax.xlane.f32.xlu0 %v356_v21 }
  0xcc   : > { %395 = vrot.lane.b32.xlu0 %v654_v0, %s814_s29 }
 0x11d   : > { %v349_v22 = vpop.xlane.xlu1 %348 }
 0x11e   : > { %v359_v23 = vsub.f32 %v337_v8, %v349_v22 }
 0x120   : > { %v363_v24 = vmul.f32 1.442695, %v359_v23 }
 0x122   : > { %718 = vpow2.f32 %v363_v24 }
 0x123   : > { %v355_v25 = vpop.xlane.xlu0 %354 }
 0x124   : > { %v361_v26 = vsub.f32 %v342_v13, %v355_v25 }
 0x125   : > { %v352_v30 = vpop.xlane.xlu1 %351 }
 0x126   : > { %v367_v27 = vmul.f32 1.442695, %v361_v26  ;;  %v360_v34 = vsub.f32 %v339_v15, %v352_v30 }
 0x128   : > { %v719_v28 = vpop.eup %718  ;;  %720 = vpow2.f32 %v367_v27  ;;  %v365_v37 = vmul.f32 1.442695, %v360_v34 }
 0x129   : > { %v371_v29 = vsel %vm346_vm1, %v719_v28, 0.0 }
 0x12a   : > { %372 = vadd.xlane.f32.xlu1 %v371_v29 }
 0x12b   : > { %v358_v31 = vpop.xlane.xlu0 %357 }
 0x12c   : > { %v362_v32 = vsub.f32 %v344_v20, %v358_v31 }
 0x12e   : > { %v721_v33 = vpop.eup %720  ;;  %v369_v35 = vmul.f32 1.442695, %v362_v32 }
 0x12f   : > { %v377_v36 = vsel %vm346_vm1, %v721_v33, 0.0 }
 0x130   : > { %722 = vpow2.f32 %v369_v35  ;;  %378 = vadd.xlane.f32.xlu2 %v377_v36 }
 0x131   : > { %724 = vpow2.f32 %v365_v37 }
 0x136   : > { %v723_v38 = vpop.eup %722 }
 0x137   : > { %v380_v39 = vsel %vm346_vm1, %v723_v38, 0.0  ;;  %v725_v40 = vpop.eup %724 }
 0x138   : > { %381 = vadd.xlane.f32.xlu2 %v380_v39  ;;  %v374_v41 = vsel %vm346_vm1, %v725_v40, 0.0 }
 0x13e   : > { %v396_v42 = vpop.permute.xlu0 %395 }
 0x13f   : > { %411 = vmatpush.bf16.msra.mxu1 %v396_v42  ;;  %658 = vmatpush.bf16.msra.mxu3 %v396_v42 }
 0x140   : > { %375 = vadd.xlane.f32.xlu2 %v374_v41 }
 0x143   : > { %393 = vrot.lane.b32.xlu1 %v653_v2, %s814_s29 }
 0x19d   : > { %v373_v43 = vpop.xlane.xlu1 %372 }
 0x19e   : > { %726 = vrcp.f32 %v373_v43 }
 0x1a3   : > { %v379_v44 = vpop.xlane.xlu2 %378 }
 0x1a4   : > { %v727_v45 = vpop.eup %726  ;;  %728 = vrcp.f32 %v379_v44 }
 0x1a5   : > { %v387_v46 = vmul.f32 %v727_v45, %v719_v28 }
 0x1a7   : > { %433 = vst.msk [vmem:[%s253_s7] sm:$0xff] %vm346_vm1, %v387_v46 }
 0x1aa   : > { %v729_v47 = vpop.eup %728 }
 0x1ab   : > { %v382_v48 = vpop.xlane.xlu2 %381  ;;  %v389_v49 = vmul.f32 %v729_v47, %v721_v33 }
 0x1ac   : > { %730 = vrcp.f32 %v382_v48 }
 0x1ad   : > { %435 = vst.msk [vmem:[%s253_s7 + $0x10] sm:$0xff] %vm346_vm1, %v389_v49 }
 0x1b2   : > { %v731_v50 = vpop.eup %730 }
 0x1b3   : > { %v376_v51 = vpop.xlane.xlu2 %375  ;;  %v390_v52 = vmul.f32 %v731_v50, %v723_v38 }
 0x1b4   : > { %732 = vrcp.f32 %v376_v51 }
 0x1b5   : > { %v394_v53 = vpop.permute.xlu1 %393  ;;  %436 = vst.msk [vmem:[%s253_s7 + $0x18] sm:$0xff] %vm346_vm1, %v390_v52  ;;  %v392_v54 = vpack.c.bf16 %v390_v52, %v389_v49 }
 0x1b6   : > { %412 = vmatpush.bf16.msra.mxu1 %v394_v53  ;;  %659 = vmatpush.bf16.msra.mxu3 %v394_v53 }
 0x1b9   : > { %642 = vmatmul.msk.bf16.vlgmr.msra.gmra.mxu3 %vm346_vm1, %v392_v54 }
 0x1ba   : > { %v733_v55 = vpop.eup %732 }
 0x1bb   : > { %v388_v56 = vmul.f32 %v733_v55, %v725_v40 }
 0x1bd   : > { %v391_v57 = vpack.c.bf16 %v388_v56, %v387_v46  ;;  %434 = vst.msk [vmem:[%s253_s7 + $0x8] sm:$0xff] %vm346_vm1, %v388_v56 }
 0x1bf   : > { %641 = vmatmul.msk.bf16.vlgmr.msra.gmra.mxu1 %vm346_vm1, %v391_v57 }
 0x1c0   : > { %761 = shalt.err (!%p758_p5)
}
 0x1c1   : > { %s815_s5 = smov 128   ;;  %s816_s7 = smov 8   ;;  %vm428_vm2 = vcmask 60416  }
 0x1c2   : > { %660 = dma.vmem_to_hbm [thread:$0]  (%p882_p4), %s465_s12, 512, %s467_s13, %s447_s14, %s815_s5, %s815_s5, %s816_s7  }
 0x1c3   : > { %s280_s10 = scalar_lea.vmem %s983_s3, %s899_s30 }
 0x23c   : > { %v414_v58 = vpop.f32.mrf.mxu1  ;;  %v419_v59 = vpop.f32.mrf.mxu3 }
 0x23d   : > { %v424_v60 = vpack.c.bf16 %v414_v58, %v414_v58  ;;  %v426_v61 = vpack.c.bf16 %v419_v59, %v419_v59 }
 0x23f   : > { %429 = vst.msk [vmem:[%s280_s10] sm:$0xf] %vm428_vm2, %v424_v60 }
 0x240   : > { %431 = vst.msk [vmem:[%s280_s10 + $0x8] sm:$0xf] %vm428_vm2, %v426_v61 }
 0x244   : > { %v416_v62 = vpop.f32.mrf.mxu1  ;;  %v421_v63 = vpop.f32.mrf.mxu3 }
 0x245   : > { %v425_v0 = vpack.c.bf16 %v416_v62, %v416_v62  ;;  %v427_v1 = vpack.c.bf16 %v421_v63, %v421_v63 }
 0x247   : > { %430 = vst.msk [vmem:[%s280_s10 + $0x4] sm:$0xf] %vm428_vm2, %v425_v0 }
 0x248   : > { %432 = vst.msk [vmem:[%s280_s10 + $0xc] sm:$0xf] %vm428_vm2, %v427_v1 }
 0x249 PF: > { %p666_p4 = scmp.ge.s32.totalorder %s812_s20, 2  ;;  %s493_s25 = sand.u32 1, %s792_s15  }
 0x24a   : > { %s494_s30 = scalar_lea.sflag [#allocation3], %s493_s25 }
 0x24b   : > { %p663_p6 = pnand %p666_p4, %p889_p8 }
 0x24d   : > { %p664_p7 = pneg %p663_p6 }
 0x24f   : > { %787 = dma.done.wait (%p664_p7), %s494_s30, 512  }
 0x250   : > { %789 = vsyncadd (%p664_p7), %s494_s30, 4294966784  ;;  %s18_s20 = sadd.s32 1, %s812_s20   ;;  %s987_s15 = smov %s796_s16 }
 0x251   : > { %p15_p9 = scmp.ge.s32.totalorder %s18_s20, 6   ;;  %s988_s16 = smov %s800_s17 }
 0x252   : > { %s989_s17 = smov %s895_s28  ;;  %s990_s18 = smov %s808_s19 }
 0x253   : > { %s991_s19 = smov %s993_s23  ;;  %17 = sbr.rel (!%p15_p9) target bundleno = 4 (0x4), region = 82 }
 0x258   :  { %500 = vsyncpa [#allocation3], 1 }
 0x259   :  { %502 = vsyncpa [#allocation3 + $0x1], 1 }

// kernel: mbart_decoder_forward.37
= control target key start
LH: loop header
LB: loop body
LE: loop exit
PB: predicated region body
PF: predicated region fallthrough
CT: control target
= control target key end

     0   :  { %vm22_vm0 = vcmask 261120   ;;  %v181_v1 = vmov 0.0   ;;  %vm77_vm1 = vcmask 523264   ;;  %s264_s1 = inlined_call_operand.vmem [shape: bf16[64,32], index: 1, kind: input, shape index: {}]   ;;  %s265_s2 = inlined_call_operand.vmem [shape: f32[1,32], index: 2, kind: input, shape index: {}]   ;;  %s266_s0 = inlined_call_operand.vmem [shape: bf16[32,64], index: 0, kind: input, shape index: {}]   ;;  %s267_s3 = inlined_call_operand.vmem [shape: f32[32,32], index: 3, kind: input, shape index: {}]   ;;  %s268_s4 = inlined_call_operand.vmem [shape: f32[32,32], index: 4, kind: output, shape index: {}]  }
   0x1   :  { %v174_v0 = vld [vmem:[%s264_s1 + $0x18] sm:$0xff]  ;;  %23 = vst.msk [vmem:[#allocation2] sm:$0xff] %vm22_vm0, %v181_v1  ;;  %v173_v2 = vld [vmem:[%s264_s1 + $0x10] sm:$0xff]  ;;  %v172_v3 = vld [vmem:[%s264_s1 + $0x8] sm:$0xff] }
   0x2   :  { %24 = vst.msk [vmem:[#allocation2 + $0x8] sm:$0xff] %vm22_vm0, %v181_v1  ;;  %88 = vmatpush.bf16.msra.mxu0 %v174_v0  ;;  %175 = vmatpush.bf16.msra.mxu1 %v174_v0  ;;  %v171_v4 = vld [vmem:[%s264_s1] sm:$0xff]  ;;  %v170_v6 = vld [vmem:[%s266_s0 + $0x8] sm:$0xff]  ;;  %v129_v24 = vld [vmem:[%s267_s3 + $0x10] sm:$0xff] }
   0x3   :  { %25 = vst.msk [vmem:[#allocation2 + $0x10] sm:$0xff] %vm22_vm0, %v181_v1  ;;  %v169_v5 = vld [vmem:[%s266_s0] sm:$0xff]  ;;  %v128_v29 = vld [vmem:[%s267_s3 + $0x8] sm:$0xff]  ;;  %v130_v32 = vld [vmem:[%s267_s3 + $0x18] sm:$0xff] }
   0x4   :  { %26 = vst.msk [vmem:[#allocation2 + $0x18] sm:$0xff] %vm22_vm0, %v181_v1  ;;  %v180_v15 = vld [vmem:[%s265_s2] ss:$0 sm:$0xff] }
   0x5   :  { %v127_v21 = vld [vmem:[%s267_s3] sm:$0xff] }
   0x6   :  { %89 = vmatpush.bf16.msra.mxu0 %v173_v2  ;;  %176 = vmatpush.bf16.msra.mxu1 %v173_v2 }
   0x8   :  { %v27_v7 = vld [vmem:[#allocation2] sm:$0xff] }
   0x9   :  { %v28_v13 = vld [vmem:[#allocation2 + $0x8] sm:$0xff] }
   0xa   :  { %90 = vmatpush.bf16.msra.mxu0 %v172_v3  ;;  %177 = vmatpush.bf16.msra.mxu1 %v172_v3  ;;  %v29_v8 = vld [vmem:[#allocation2 + $0x10] sm:$0xff] }
   0xb   :  { %v30_v14 = vld [vmem:[#allocation2 + $0x18] sm:$0xff] }
   0xe   :  { %91 = vmatpush.bf16.msra.mxu0 %v171_v4  ;;  %178 = vmatpush.bf16.msra.mxu1 %v171_v4 }
  0x11   :  { %167 = vmatmul.msk.bf16.vlgmr.msra.gmra.mxu0 %vm77_vm1, %v169_v5  ;;  %168 = vmatmul.msk.bf16.vlgmr.msra.gmra.mxu1 %vm77_vm1, %v170_v6 }
  0x8e   :  { %v93_v9 = vpop.f32.mrf.mxu0  ;;  %v98_v10 = vpop.f32.mrf.mxu1 }
  0x8f   :  { %v103_v11 = vadd.f32 %v93_v9, %v27_v7  ;;  %v105_v12 = vadd.f32 %v98_v10, %v29_v8 }
  0x91   :  { %108 = vst.msk [vmem:[#allocation2] sm:$0xff] %vm22_vm0, %v103_v11 }
  0x92   :  { %110 = vst.msk [vmem:[#allocation2 + $0x10] sm:$0xff] %vm22_vm0, %v105_v12 }
  0x96   :  { %v95_v16 = vpop.f32.mrf.mxu0  ;;  %v100_v17 = vpop.f32.mrf.mxu1 }
  0x97   :  { %v104_v18 = vadd.f32 %v95_v16, %v28_v13  ;;  %v106_v19 = vadd.f32 %v100_v17, %v30_v14 }
  0x98   :  { %v115_v20 = vld [vmem:[#allocation2] sm:$0xff] }
  0x99   :  { %v123_v22 = vadd.f32 %v180_v15, %v115_v20  ;;  %v117_v23 = vld [vmem:[#allocation2 + $0x10] sm:$0xff]  ;;  %109 = vst.msk [vmem:[#allocation2 + $0x8] sm:$0xff] %vm22_vm0, %v104_v18 }
  0x9a   :  { %v125_v25 = vadd.f32 %v180_v15, %v117_v23  ;;  %111 = vst.msk [vmem:[#allocation2 + $0x18] sm:$0xff] %vm22_vm0, %v106_v19 }
  0x9b   :  { %v131_v26 = vadd.f32 %v127_v21, %v123_v22 }
  0x9c   :  { %v133_v27 = vadd.f32 %v129_v24, %v125_v25 }
  0x9d   :  { %135 = vst.msk [vmem:[%s268_s4] sm:$0xff] %vm22_vm0, %v131_v26 }
  0x9e   :  { %137 = vst.msk [vmem:[%s268_s4 + $0x10] sm:$0xff] %vm22_vm0, %v133_v27 }
  0xa0   :  { %v116_v28 = vld [vmem:[#allocation2 + $0x8] sm:$0xff] }
  0xa1   :  { %v124_v30 = vadd.f32 %v180_v15, %v116_v28  ;;  %v118_v31 = vld [vmem:[#allocation2 + $0x18] sm:$0xff] }
  0xa2   :  { %v126_v33 = vadd.f32 %v180_v15, %v118_v31 }
  0xa3   :  { %v132_v34 = vadd.f32 %v128_v29, %v124_v30 }
  0xa4   :  { %v134_v35 = vadd.f32 %v130_v32, %v126_v33 }
  0xa5   :  { %136 = vst.msk [vmem:[%s268_s4 + $0x8] sm:$0xff] %vm22_vm0, %v132_v34 }
  0xa6   :  { %138 = vst.msk [vmem:[%s268_s4 + $0x18] sm:$0xff] %vm22_vm0, %v134_v35 }

</bundles_post_ra>
